<compile_context>
chip_gen: v6e
topology: v6e:2x2x1
jax: 0.10.0
libtpu: 0.0.40
codegen_flags: <defaults>
</compile_context>

<pallas_src>
import functools

import jax
import jax.numpy as jnp
from jax.experimental import pallas as pl
from jax.experimental.pallas import tpu as pltpu


def _round_up(n: int, m: int) -> int:
    return ((n + m - 1) // m) * m


def edgeconv_mlp_kernel(xij_ref, e_ref,
                        w0a_ref, w0e_ref, b0_ref,
                        wh_ref, bh_ref,
                        wout_ref, bout_ref,
                        gamma_ref, beta_ref,
                        out_ref,
                        *, n_layers, layer_norm, eps, compute_dtype):
    cd = compute_dtype

    # First Linear(3*in_dim -> h_dim) as a split-sum over the concat:
    #   W0^T @ [x_i; x_j; e] == W0a^T @ [x_i; x_j] + W0e^T @ e
    h = jnp.dot(w0a_ref[...], xij_ref[...],
                preferred_element_type=jnp.float32)
    h = h + jnp.dot(w0e_ref[...], e_ref[...].astype(cd),
                    preferred_element_type=jnp.float32)
    h = jnp.maximum(h + b0_ref[...], 0.0)                 # [h_dim, tile_e]

    # n_layers x (Linear(h_dim -> h_dim) + ReLU), statically unrolled.
    for l in range(n_layers):
        h = jnp.dot(wh_ref[l], h.astype(cd),
                    preferred_element_type=jnp.float32)
        h = jnp.maximum(h + bh_ref[l], 0.0)

    # Final Linear(h_dim -> out_dim).
    y = jnp.dot(wout_ref[...], h.astype(cd),
                preferred_element_type=jnp.float32) + bout_ref[...]

    if layer_norm:
        # GroupNorm(num_groups=1, C=out_dim): per edge (lane), normalize over
        # the channel axis (sublanes, axis 0), then per-channel affine.
        mean = jnp.mean(y, axis=0, keepdims=True)
        var = jnp.mean((y - mean) * (y - mean), axis=0, keepdims=True)
        y = (y - mean) * jax.lax.rsqrt(var + eps)
        y = y * gamma_ref[...] + beta_ref[...]

    # Residual: e_new = e + msg   (float32 math, cast back to e's dtype).
    out_ref[...] = (e_ref[...].astype(jnp.float32) + y).astype(out_ref.dtype)


def edge_conv_forward(x, edge_index, e, params, *,
                      n_layers, layer_norm, tile_e=2048, eps=1e-5,
                      compute_dtype=jnp.bfloat16):
    """EdgeConv forward.  Returns e_new with the shape and dtype of `e`."""
    E, in_dim = e.shape
    w0, b0, wh, bh, wout, bout, gamma, beta = params
    h_dim = w0.shape[1]
    out_dim = wout.shape[1]
    assert w0.shape[0] == 3 * in_dim
    assert out_dim == in_dim, "residual e + msg requires out_dim == in_dim"

    # ---- XLA glue: gather endpoints, stack + transpose to lane-dense layout ----
    # TODO(synk): the per-edge row gather could move in-kernel (whole-x VMEM
    # resident + jnp.take on an int32 edge_index tile) to drop another HBM
    # round-trip; kept as XLA glue here for lowering robustness.
    x_cd = x.astype(compute_dtype)
    # [2*in_dim, E]: rows [0:in_dim] = x_i^T (dest), rows [in_dim:2*in_dim] = x_j^T (src)
    xij_t = jnp.concatenate([x_cd[edge_index[1]], x_cd[edge_index[0]]], axis=1).T
    e_t = e.T                                              # [in_dim, E], original dtype

    # ---- pad the edge axis so any E works (tail is computed then sliced) ----
    tile_e = min(tile_e, _round_up(max(E, 1), 128))
    e_pad = _round_up(E, tile_e)
    if e_pad != E:
        pad = ((0, 0), (0, e_pad - E))
        xij_t = jnp.pad(xij_t, pad)
        e_t = jnp.pad(e_t, pad)

    # ---- weights: transpose for the [feat, edges] layout, split W0 ----
    w0a_t = w0[:2 * in_dim].T.astype(compute_dtype)        # [h_dim, 2*in_dim]  (x_i, x_j)
    w0e_t = w0[2 * in_dim:].T.astype(compute_dtype)        # [h_dim, in_dim]    (e)
    b0_col = b0.reshape(h_dim, 1).astype(jnp.float32)
    if n_layers > 0:
        wh_t = jnp.swapaxes(wh, 1, 2).astype(compute_dtype)       # [L, h_dim, h_dim]
        bh_col = bh.reshape(n_layers, h_dim, 1).astype(jnp.float32)
    else:
        # dummy (unused) stacks so the BlockSpecs stay well-formed at n_layers=0
        wh_t = jnp.zeros((1, h_dim, h_dim), compute_dtype)
        bh_col = jnp.zeros((1, h_dim, 1), jnp.float32)
    wout_t = wout.T.astype(compute_dtype)                  # [out_dim, h_dim]
    bout_col = bout.reshape(out_dim, 1).astype(jnp.float32)
    gamma_col = gamma.reshape(out_dim, 1).astype(jnp.float32)
    beta_col = beta.reshape(out_dim, 1).astype(jnp.float32)

    kernel = functools.partial(edgeconv_mlp_kernel,
                               n_layers=n_layers, layer_norm=layer_norm,
                               eps=eps, compute_dtype=compute_dtype)

    def const(shape):   # tiny whole-array operand, same block every grid step
        return pl.BlockSpec(shape, lambda i: (0,) * len(shape))

    out_t = pl.pallas_call(
        kernel,
        out_shape=jax.ShapeDtypeStruct((out_dim, e_pad), e.dtype),
        grid_spec=pltpu.PrefetchScalarGridSpec(
            num_scalar_prefetch=0,
            grid=(e_pad // tile_e,),
            in_specs=[
                pl.BlockSpec((2 * in_dim, tile_e), lambda i: (0, i)),  # [x_i^T; x_j^T]
                pl.BlockSpec((in_dim, tile_e), lambda i: (0, i)),      # e^T (f32)
                const((h_dim, 2 * in_dim)),                            # W0a^T
                const((h_dim, in_dim)),                                # W0e^T
                const((h_dim, 1)),                                     # b0
                const((wh_t.shape[0], h_dim, h_dim)),                  # Wh^T stack
                const((wh_t.shape[0], h_dim, 1)),                      # bh stack
                const((out_dim, h_dim)),                               # Wout^T
                const((out_dim, 1)),                                   # bout
                const((out_dim, 1)),                                   # gamma
                const((out_dim, 1)),                                   # beta
            ],
            out_specs=pl.BlockSpec((out_dim, tile_e), lambda i: (0, i)),
        ),
        compiler_params=pltpu.CompilerParams(
            dimension_semantics=("parallel",)),
    )(xij_t, e_t, w0a_t, w0e_t, b0_col, wh_t, bh_col, wout_t, bout_col,
      gamma_col, beta_col)

    return out_t[:, :E].T


def reference_forward(x, edge_index, e, params, *, n_layers, layer_norm, eps=1e-5):
    """Pure-JAX float32 reference mirroring the PyTorch module."""
    w0, b0, wh, bh, wout, bout, gamma, beta = params
    x_j = x[edge_index[0]]
    x_i = x[edge_index[1]]
    h = jnp.concatenate([x_i, x_j, e], axis=1)
    h = jnp.maximum(h @ w0 + b0[0], 0.0)
    for l in range(n_layers):
        h = jnp.maximum(h @ wh[l] + bh[l], 0.0)
    y = h @ wout + bout[0]
    if layer_norm:
        mean = jnp.mean(y, axis=-1, keepdims=True)
        var = jnp.mean((y - mean) ** 2, axis=-1, keepdims=True)
        y = (y - mean) * jax.lax.rsqrt(var + eps)
        y = y * gamma[0] + beta[0]
    return e + y


def _make_params(key, in_dim, h_dim, out_dim, n_layers):
    keys = jax.random.split(key, 8)
    scale = 0.2
    w0 = scale * jax.random.normal(keys[0], (3 * in_dim, h_dim), dtype=jnp.float32)
    b0 = scale * jax.random.normal(keys[1], (1, h_dim), dtype=jnp.float32)
    nl = max(n_layers, 1)
    wh = scale * jax.random.normal(keys[2], (nl, h_dim, h_dim), dtype=jnp.float32)
    bh = scale * jax.random.normal(keys[3], (nl, h_dim), dtype=jnp.float32)
    if n_layers == 0:
        wh = wh[:0]
        bh = bh[:0]
    wout = scale * jax.random.normal(keys[4], (h_dim, out_dim), dtype=jnp.float32)
    bout = scale * jax.random.normal(keys[5], (1, out_dim), dtype=jnp.float32)
    gamma = 1.0 + 0.1 * jax.random.normal(keys[6], (1, out_dim), dtype=jnp.float32)
    beta = 0.1 * jax.random.normal(keys[7], (1, out_dim), dtype=jnp.float32)
    return (w0, b0, wh, bh, wout, bout, gamma, beta)


if __name__ == "__main__":
    in_dim = 8           # node / edge feature dim (out_dim == in_dim for residual)
    h_dim = 32
    out_dim = 8
    N = 300              # number of nodes
    E = 4000             # number of edges (not a tile multiple -> exercises padding)

    key = jax.random.PRNGKey(0)
    k_x, k_e, k_idx, k_p1, k_p2 = jax.random.split(key, 5)

    x = jax.random.normal(k_x, (N, in_dim), dtype=jnp.float32)
    e = jax.random.normal(k_e, (E, in_dim), dtype=jnp.float32)
    edge_index = jax.random.randint(k_idx, (2, E), 0, N, dtype=jnp.int32)

    # --- config 1: n_layers=2, layer_norm=True (main path) ---
    n_layers, layer_norm = 2, True
    params = _make_params(k_p1, in_dim, h_dim, out_dim, n_layers)
    fwd = jax.jit(functools.partial(edge_conv_forward,
                                    n_layers=n_layers, layer_norm=layer_norm,
                                    tile_e=2048))
    e_new = jax.block_until_ready(fwd(x, edge_index, e, params))
    e_ref = reference_forward(x, edge_index, e, params,
                              n_layers=n_layers, layer_norm=layer_norm)
    assert e_new.shape == e.shape and e_new.dtype == e.dtype
    err = jnp.abs(e_new - e_ref)
    # bf16 MXU operands vs. a float32 reference: loose elementwise tolerance
    # plus a tighter mean-absolute-error check.
    assert jnp.allclose(e_new, e_ref, atol=1.5e-1, rtol=1e-1), float(err.max())
    assert float(err.mean()) < 3e-2, float(err.mean())

    # --- config 2: n_layers=0, layer_norm=False (exercises the other branches) ---
    n_layers2, layer_norm2 = 0, False
    params2 = _make_params(k_p2, in_dim, h_dim, out_dim, n_layers2)
    fwd2 = jax.jit(functools.partial(edge_conv_forward,
                                     n_layers=n_layers2, layer_norm=layer_norm2,
                                     tile_e=2048))
    e_new2 = jax.block_until_ready(fwd2(x, edge_index, e, params2))
    e_ref2 = reference_forward(x, edge_index, e, params2,
                               n_layers=n_layers2, layer_norm=layer_norm2)
    err2 = jnp.abs(e_new2 - e_ref2)
    assert jnp.allclose(e_new2, e_ref2, atol=1.5e-1, rtol=1e-1), float(err2.max())
    assert float(err2.mean()) < 3e-2, float(err2.mean())

    print("KERNEL_OK")
</pallas_src>

<mosaic_0001>
module attributes {stable_mosaic.version = 11 : i64} {
  func.func @edgeconv_mlp_kernel(%arg0: i32, %arg1: memref<16x2048xbf16, #tpu.memory_space<vmem>>, %arg2: memref<8x2048xf32, #tpu.memory_space<vmem>>, %arg3: memref<32x16xbf16, #tpu.memory_space<vmem>>, %arg4: memref<32x8xbf16, #tpu.memory_space<vmem>>, %arg5: memref<32x1xf32, #tpu.memory_space<vmem>>, %arg6: memref<2x32x32xbf16, #tpu.memory_space<vmem>>, %arg7: memref<2x32x1xf32, #tpu.memory_space<vmem>>, %arg8: memref<8x32xbf16, #tpu.memory_space<vmem>>, %arg9: memref<8x1xf32, #tpu.memory_space<vmem>>, %arg10: memref<8x1xf32, #tpu.memory_space<vmem>>, %arg11: memref<8x1xf32, #tpu.memory_space<vmem>>, %arg12: memref<8x2048xf32, #tpu.memory_space<vmem>>) attributes {dimension_semantics = [#tpu.dimension_semantics<parallel>], iteration_bounds = array<i64: 2>, scalar_prefetch = 0 : i64, scratch_operands = 0 : i64, tpu.core_type = #tpu.core_type<tc>, window_params = [{transform_indices = @transform_0, window_bounds = array<i64: 16, 2048>}, {transform_indices = @transform_1, window_bounds = array<i64: 8, 2048>}, {pipeline_mode = #tpu.pipeline_mode<synchronous>, transform_indices = @transform_2, window_bounds = array<i64: 32, 16>}, {pipeline_mode = #tpu.pipeline_mode<synchronous>, transform_indices = @transform_3, window_bounds = array<i64: 32, 8>}, {pipeline_mode = #tpu.pipeline_mode<synchronous>, transform_indices = @transform_4, window_bounds = array<i64: 32, 1>}, {pipeline_mode = #tpu.pipeline_mode<synchronous>, transform_indices = @transform_5, window_bounds = array<i64: 2, 32, 32>}, {pipeline_mode = #tpu.pipeline_mode<synchronous>, transform_indices = @transform_6, window_bounds = array<i64: 2, 32, 1>}, {pipeline_mode = #tpu.pipeline_mode<synchronous>, transform_indices = @transform_7, window_bounds = array<i64: 8, 32>}, {pipeline_mode = #tpu.pipeline_mode<synchronous>, transform_indices = @transform_8, window_bounds = array<i64: 8, 1>}, {pipeline_mode = #tpu.pipeline_mode<synchronous>, transform_indices = @transform_9, window_bounds = array<i64: 8, 1>}, {pipeline_mode = #tpu.pipeline_mode<synchronous>, transform_indices = @transform_10, window_bounds = array<i64: 8, 1>}, {transform_indices = @transform_11, window_bounds = array<i64: 8, 2048>}]} {
    %c0 = arith.constant 0 : index
    %c0_0 = arith.constant 0 : index
    %0 = vector.load %arg3[%c0, %c0_0] : memref<32x16xbf16, #tpu.memory_space<vmem>>, vector<32x16xbf16>
    %c0_1 = arith.constant 0 : index
    %c0_2 = arith.constant 0 : index
    %1 = vector.load %arg1[%c0_1, %c0_2] : memref<16x2048xbf16, #tpu.memory_space<vmem>>, vector<16x2048xbf16>
    %cst = arith.constant dense<0.000000e+00> : vector<32x2048xf32>
    %2 = tpu.matmul %0, %1, %cst {dimension_numbers = #tpu.dot_dimension_numbers<[1], [0], [0], [1], [0, 0, 1, 1], [], []>} : vector<32x16xbf16>, vector<16x2048xbf16>, vector<32x2048xf32> -> vector<32x2048xf32>
    %c0_3 = arith.constant 0 : index
    %c0_4 = arith.constant 0 : index
    %3 = vector.load %arg4[%c0_3, %c0_4] : memref<32x8xbf16, #tpu.memory_space<vmem>>, vector<32x8xbf16>
    %c0_5 = arith.constant 0 : index
    %c0_6 = arith.constant 0 : index
    %4 = vector.load %arg2[%c0_5, %c0_6] : memref<8x2048xf32, #tpu.memory_space<vmem>>, vector<8x2048xf32>
    %5 = arith.truncf %4 : vector<8x2048xf32> to vector<8x2048xbf16>
    %cst_7 = arith.constant dense<0.000000e+00> : vector<32x2048xf32>
    %6 = tpu.matmul %3, %5, %cst_7 {dimension_numbers = #tpu.dot_dimension_numbers<[1], [0], [0], [1], [0, 0, 1, 1], [], []>} : vector<32x8xbf16>, vector<8x2048xbf16>, vector<32x2048xf32> -> vector<32x2048xf32>
    %7 = arith.addf %2, %6 : vector<32x2048xf32>
    %c0_8 = arith.constant 0 : index
    %c0_9 = arith.constant 0 : index
    %8 = vector.load %arg5[%c0_8, %c0_9] : memref<32x1xf32, #tpu.memory_space<vmem>>, vector<32x1xf32>
    %9 = vector.broadcast %8 : vector<32x1xf32> to vector<32x2048xf32>
    %10 = arith.addf %7, %9 : vector<32x2048xf32>
    %cst_10 = arith.constant 0.000000e+00 : f32
    %11 = vector.broadcast %cst_10 : f32 to vector<32x2048xf32>
    %12 = arith.maximumf %10, %11 : vector<32x2048xf32>
    %c0_11 = arith.constant 0 : index
    %c0_12 = arith.constant 0 : index
    %c0_13 = arith.constant 0 : index
    %13 = vector.load %arg6[%c0_11, %c0_12, %c0_13] : memref<2x32x32xbf16, #tpu.memory_space<vmem>>, vector<1x32x32xbf16>
    %14 = vector.shape_cast %13 : vector<1x32x32xbf16> to vector<32x32xbf16>
    %15 = arith.truncf %12 : vector<32x2048xf32> to vector<32x2048xbf16>
    %cst_14 = arith.constant dense<0.000000e+00> : vector<32x2048xf32>
    %16 = tpu.matmul %14, %15, %cst_14 {dimension_numbers = #tpu.dot_dimension_numbers<[1], [0], [0], [1], [0, 0, 1, 1], [], []>} : vector<32x32xbf16>, vector<32x2048xbf16>, vector<32x2048xf32> -> vector<32x2048xf32>
    %c0_15 = arith.constant 0 : index
    %c0_16 = arith.constant 0 : index
    %c0_17 = arith.constant 0 : index
    %17 = vector.load %arg7[%c0_15, %c0_16, %c0_17] : memref<2x32x1xf32, #tpu.memory_space<vmem>>, vector<1x32x1xf32>
    %18 = vector.shape_cast %17 : vector<1x32x1xf32> to vector<32x1xf32>
    %19 = vector.broadcast %18 : vector<32x1xf32> to vector<32x2048xf32>
    %20 = arith.addf %16, %19 : vector<32x2048xf32>
    %cst_18 = arith.constant 0.000000e+00 : f32
    %21 = vector.broadcast %cst_18 : f32 to vector<32x2048xf32>
    %22 = arith.maximumf %20, %21 : vector<32x2048xf32>
    %c1 = arith.constant 1 : index
    %c0_19 = arith.constant 0 : index
    %c0_20 = arith.constant 0 : index
    %23 = vector.load %arg6[%c1, %c0_19, %c0_20] : memref<2x32x32xbf16, #tpu.memory_space<vmem>>, vector<1x32x32xbf16>
    %24 = vector.shape_cast %23 : vector<1x32x32xbf16> to vector<32x32xbf16>
    %25 = arith.truncf %22 : vector<32x2048xf32> to vector<32x2048xbf16>
    %cst_21 = arith.constant dense<0.000000e+00> : vector<32x2048xf32>
    %26 = tpu.matmul %24, %25, %cst_21 {dimension_numbers = #tpu.dot_dimension_numbers<[1], [0], [0], [1], [0, 0, 1, 1], [], []>} : vector<32x32xbf16>, vector<32x2048xbf16>, vector<32x2048xf32> -> vector<32x2048xf32>
    %c1_22 = arith.constant 1 : index
    %c0_23 = arith.constant 0 : index
    %c0_24 = arith.constant 0 : index
    %27 = vector.load %arg7[%c1_22, %c0_23, %c0_24] : memref<2x32x1xf32, #tpu.memory_space<vmem>>, vector<1x32x1xf32>
    %28 = vector.shape_cast %27 : vector<1x32x1xf32> to vector<32x1xf32>
    %29 = vector.broadcast %28 : vector<32x1xf32> to vector<32x2048xf32>
    %30 = arith.addf %26, %29 : vector<32x2048xf32>
    %cst_25 = arith.constant 0.000000e+00 : f32
    %31 = vector.broadcast %cst_25 : f32 to vector<32x2048xf32>
    %32 = arith.maximumf %30, %31 : vector<32x2048xf32>
    %c0_26 = arith.constant 0 : index
    %c0_27 = arith.constant 0 : index
    %33 = vector.load %arg8[%c0_26, %c0_27] : memref<8x32xbf16, #tpu.memory_space<vmem>>, vector<8x32xbf16>
    %34 = arith.truncf %32 : vector<32x2048xf32> to vector<32x2048xbf16>
    %cst_28 = arith.constant dense<0.000000e+00> : vector<8x2048xf32>
    %35 = tpu.matmul %33, %34, %cst_28 {dimension_numbers = #tpu.dot_dimension_numbers<[1], [0], [0], [1], [0, 0, 1, 1], [], []>} : vector<8x32xbf16>, vector<32x2048xbf16>, vector<8x2048xf32> -> vector<8x2048xf32>
    %c0_29 = arith.constant 0 : index
    %c0_30 = arith.constant 0 : index
    %36 = vector.load %arg9[%c0_29, %c0_30] : memref<8x1xf32, #tpu.memory_space<vmem>>, vector<8x1xf32>
    %37 = vector.broadcast %36 : vector<8x1xf32> to vector<8x2048xf32>
    %38 = arith.addf %35, %37 : vector<8x2048xf32>
    %cst_31 = arith.constant dense<0.000000e+00> : vector<2048xf32>
    %39 = vector.multi_reduction <add>, %38, %cst_31 [0] : vector<8x2048xf32> to vector<2048xf32>
    %40 = vector.shape_cast %39 : vector<2048xf32> to vector<1x2048xf32>
    %cst_32 = arith.constant 8.000000e+00 : f32
    %41 = vector.broadcast %cst_32 : f32 to vector<1x2048xf32>
    %42 = arith.divf %40, %41 : vector<1x2048xf32>
    %43 = vector.broadcast %42 : vector<1x2048xf32> to vector<8x2048xf32>
    %44 = arith.subf %38, %43 : vector<8x2048xf32>
    %45 = vector.broadcast %42 : vector<1x2048xf32> to vector<8x2048xf32>
    %46 = arith.subf %38, %45 : vector<8x2048xf32>
    %47 = arith.mulf %44, %46 : vector<8x2048xf32>
    %cst_33 = arith.constant dense<0.000000e+00> : vector<2048xf32>
    %48 = vector.multi_reduction <add>, %47, %cst_33 [0] : vector<8x2048xf32> to vector<2048xf32>
    %49 = vector.shape_cast %48 : vector<2048xf32> to vector<1x2048xf32>
    %cst_34 = arith.constant 8.000000e+00 : f32
    %50 = vector.broadcast %cst_34 : f32 to vector<1x2048xf32>
    %51 = arith.divf %49, %50 : vector<1x2048xf32>
    %52 = vector.broadcast %42 : vector<1x2048xf32> to vector<8x2048xf32>
    %53 = arith.subf %38, %52 : vector<8x2048xf32>
    %cst_35 = arith.constant 9.99999974E-6 : f32
    %54 = vector.broadcast %cst_35 : f32 to vector<1x2048xf32>
    %55 = arith.addf %51, %54 : vector<1x2048xf32>
    %56 = math.rsqrt %55 : vector<1x2048xf32>
    %57 = vector.broadcast %56 : vector<1x2048xf32> to vector<8x2048xf32>
    %58 = arith.mulf %53, %57 : vector<8x2048xf32>
    %c0_36 = arith.constant 0 : index
    %c0_37 = arith.constant 0 : index
    %59 = vector.load %arg10[%c0_36, %c0_37] : memref<8x1xf32, #tpu.memory_space<vmem>>, vector<8x1xf32>
    %60 = vector.broadcast %59 : vector<8x1xf32> to vector<8x2048xf32>
    %61 = arith.mulf %58, %60 : vector<8x2048xf32>
    %c0_38 = arith.constant 0 : index
    %c0_39 = arith.constant 0 : index
    %62 = vector.load %arg11[%c0_38, %c0_39] : memref<8x1xf32, #tpu.memory_space<vmem>>, vector<8x1xf32>
    %63 = vector.broadcast %62 : vector<8x1xf32> to vector<8x2048xf32>
    %64 = arith.addf %61, %63 : vector<8x2048xf32>
    %c0_40 = arith.constant 0 : index
    %c0_41 = arith.constant 0 : index
    %65 = vector.load %arg2[%c0_40, %c0_41] : memref<8x2048xf32, #tpu.memory_space<vmem>>, vector<8x2048xf32>
    %66 = arith.addf %65, %64 : vector<8x2048xf32>
    %c0_42 = arith.constant 0 : index
    %c0_43 = arith.constant 0 : index
    %67 = vector.load %arg12[%c0_42, %c0_43] : memref<8x2048xf32, #tpu.memory_space<vmem>>, vector<8x2048xf32>
    tpu.vector_store %arg12[%c0_42, %c0_43], %66 {strides = array<i32>} : memref<8x2048xf32, #tpu.memory_space<vmem>>, vector<8x2048xf32>,
    return
  }
  func.func @transform_0(%arg0: i32) -> (i32, i32) {
    %c0_i32 = arith.constant 0 : i32
    %c0_i32_0 = arith.constant 0 : i32
    return %c0_i32, %arg0 : i32, i32
  }
  func.func @transform_1(%arg0: i32) -> (i32, i32) {
    %c0_i32 = arith.constant 0 : i32
    %c0_i32_0 = arith.constant 0 : i32
    return %c0_i32, %arg0 : i32, i32
  }
  func.func @transform_2(%arg0: i32) -> (i32, i32) {
    %c0_i32 = arith.constant 0 : i32
    %c0_i32_0 = arith.constant 0 : i32
    %c0_i32_1 = arith.constant 0 : i32
    return %c0_i32, %c0_i32_0 : i32, i32
  }
  func.func @transform_3(%arg0: i32) -> (i32, i32) {
    %c0_i32 = arith.constant 0 : i32
    %c0_i32_0 = arith.constant 0 : i32
    %c0_i32_1 = arith.constant 0 : i32
    return %c0_i32, %c0_i32_0 : i32, i32
  }
  func.func @transform_4(%arg0: i32) -> (i32, i32) {
    %c0_i32 = arith.constant 0 : i32
    %c0_i32_0 = arith.constant 0 : i32
    %c0_i32_1 = arith.constant 0 : i32
    return %c0_i32, %c0_i32_0 : i32, i32
  }
  func.func @transform_5(%arg0: i32) -> (i32, i32, i32) {
    %c0_i32 = arith.constant 0 : i32
    %c0_i32_0 = arith.constant 0 : i32
    %c0_i32_1 = arith.constant 0 : i32
    %c0_i32_2 = arith.constant 0 : i32
    return %c0_i32, %c0_i32_0, %c0_i32_1 : i32, i32, i32
  }
  func.func @transform_6(%arg0: i32) -> (i32, i32, i32) {
    %c0_i32 = arith.constant 0 : i32
    %c0_i32_0 = arith.constant 0 : i32
    %c0_i32_1 = arith.constant 0 : i32
    %c0_i32_2 = arith.constant 0 : i32
    return %c0_i32, %c0_i32_0, %c0_i32_1 : i32, i32, i32
  }
  func.func @transform_7(%arg0: i32) -> (i32, i32) {
    %c0_i32 = arith.constant 0 : i32
    %c0_i32_0 = arith.constant 0 : i32
    %c0_i32_1 = arith.constant 0 : i32
    return %c0_i32, %c0_i32_0 : i32, i32
  }
  func.func @transform_8(%arg0: i32) -> (i32, i32) {
    %c0_i32 = arith.constant 0 : i32
    %c0_i32_0 = arith.constant 0 : i32
    %c0_i32_1 = arith.constant 0 : i32
    return %c0_i32, %c0_i32_0 : i32, i32
  }
  func.func @transform_9(%arg0: i32) -> (i32, i32) {
    %c0_i32 = arith.constant 0 : i32
    %c0_i32_0 = arith.constant 0 : i32
    %c0_i32_1 = arith.constant 0 : i32
    return %c0_i32, %c0_i32_0 : i32, i32
  }
  func.func @transform_10(%arg0: i32) -> (i32, i32) {
    %c0_i32 = arith.constant 0 : i32
    %c0_i32_0 = arith.constant 0 : i32
    %c0_i32_1 = arith.constant 0 : i32
    return %c0_i32, %c0_i32_0 : i32, i32
  }
  func.func @transform_11(%arg0: i32) -> (i32, i32) {
    %c0_i32 = arith.constant 0 : i32
    %c0_i32_0 = arith.constant 0 : i32
    return %c0_i32, %arg0 : i32, i32
  }
}

</mosaic_0001>

<bundles_post_ra>
// kernel: edge_conv_forward.1
= control target key start
LH: loop header
LB: loop body
LE: loop exit
PB: predicated region body
PF: predicated region fallthrough
CT: control target
= control target key end

     0   :  { %s3933_s17 = smov 0   ;;  %s3935_s18 = smov 0   ;;  %s5059_s0 = inlined_call_operand.vmem [shape: bf16[16,4096], index: 0, kind: input, shape index: {}]   ;;  %s5060_s1 = inlined_call_operand.vmem [shape: f32[8,4096], index: 1, kind: input, shape index: {}]   ;;  %s5061_s2 = inlined_call_operand.vmem [shape: bf16[32,16], index: 2, kind: input, shape index: {}]   ;;  %s5062_s3 = inlined_call_operand.vmem [shape: bf16[32,8], index: 3, kind: input, shape index: {}]   ;;  %s5063_s4 = inlined_call_operand.vmem [shape: f32[32,1], index: 4, kind: input, shape index: {}]   ;;  %s5064_s5 = inlined_call_operand.vmem [shape: bf16[2,32,32], index: 5, kind: input, shape index: {}]   ;;  %s5065_s6 = inlined_call_operand.vmem [shape: f32[2,32,1], index: 6, kind: input, shape index: {}]   ;;  %s5066_s7 = inlined_call_operand.vmem [shape: bf16[8,32], index: 7, kind: input, shape index: {}]   ;;  %s5067_s8 = inlined_call_operand.vmem [shape: f32[8,1], index: 8, kind: input, shape index: {}]   ;;  %s5068_s9 = inlined_call_operand.vmem [shape: f32[8,1], index: 9, kind: input, shape index: {}]   ;;  %s5069_s10 = inlined_call_operand.vmem [shape: f32[8,1], index: 10, kind: input, shape index: {}]   ;;  %s5070_s11 = inlined_call_operand.vmem [shape: f32[8,4096], index: 11, kind: output, shape index: {}]  }
   0x1   :  { %s3937_s19 = smov 0  }
   0x2 LB: > { %s3637_s20 = sadd.s32 4294967295, %s3870_s19   ;;  %s3950_s21 = sadd.s32 1, %s3870_s19   ;;  %s3870_s19 = sphi %s3937_s19, %s5120_s19   ;;  %s3866_s18 = sphi %s3935_s18, %s5119_s18   ;;  %s3862_s17 = sphi %s3933_s17, %s5118_s17  }
   0x3   : > { %s25_s22 = ssub.s32 %s3870_s19, %s3950_s21  ;;  %s28_s23 = sadd.s32 1, %s3866_s18 }
   0x4   : > { %p26_p0 = scmp.eq.s32.totalorder %s25_s22, 0  ;;  %p35_p1 = scmp.ne.s32.totalorder %s3866_s18, %s3862_s17 }
   0x5   : > { %p36_p2 = scmp.eq.s32.totalorder %s3870_s19, 0  ;;  %p3640_p4 = scmp.ge.s32.totalorder %s3870_s19, 2 }
   0x6   : > { %s3959_s24 = scalar_select %p26_p0, %s3866_s18, %s28_s23  }
   0x7   : > { %p37_p3 = por %p36_p2, %p35_p1  ;;  %329 = sbr.rel (%p3640_p4) target bundleno = 24 (0x18), region = 52 }
   0xc   : > { %332 = sbr.rel (!%p37_p3) target bundleno = 24 (0x18), region = 56  ;;  %s334_s25 = sand.u32 (%p37_p3), 1, %s3866_s18  }
   0xd   : > { %s3764_s26 = sshll.u32 (%p37_p3), %s3870_s19, 6  ;;  %s3641_s27 = sshll.u32 (%p37_p3), %s334_s25, 7 }
   0xe   : > { %s3967_s30 = scalar_lea.vmem (%p37_p3), %s5059_s0, %s3764_s26  ;;  %s336_s12 = scalar_lea.vmem (%p37_p3), [#allocation2], %s3641_s27 }
   0xf   : > { %v352_v0 = vld [vmem:[%s3967_s30] sm:$0xff] (%p37_p3)  ;;  %v354_v1 = vld [vmem:[%s3967_s30 + $0x8] sm:$0xff] (%p37_p3)  ;;  %v356_v2 = vld [vmem:[%s3967_s30 + $0x10] sm:$0xff] (%p37_p3) }
  0x10   : > { %353 = vst [vmem:[%s336_s12] sm:$0xff] (%p37_p3), %v352_v0  ;;  %355 = vst [vmem:[%s336_s12 + $0x8] sm:$0xff] (%p37_p3), %v354_v1  ;;  %v358_v3 = vld [vmem:[%s3967_s30 + $0x18] sm:$0xff] (%p37_p3)  ;;  %v360_v4 = vld [vmem:[%s3967_s30 + $0x20] sm:$0xff] (%p37_p3) }
  0x11   : > { %357 = vst [vmem:[%s336_s12 + $0x10] sm:$0xff] %v356_v2  ;;  %v362_v5 = vld [vmem:[%s3967_s30 + $0x28] sm:$0xff]  ;;  %359 = vst [vmem:[%s336_s12 + $0x18] sm:$0xff] %v358_v3  ;;  %v364_v6 = vld [vmem:[%s3967_s30 + $0x30] sm:$0xff] }
  0x12   : > { %361 = vst [vmem:[%s336_s12 + $0x20] sm:$0xff] %v360_v4  ;;  %363 = vst [vmem:[%s336_s12 + $0x28] sm:$0xff] %v362_v5  ;;  %v366_v7 = vld [vmem:[%s3967_s30 + $0x38] sm:$0xff]  ;;  %v368_v8 = vld [vmem:[%s3967_s30 + $0x80] sm:$0xff] }
  0x13   : > { %365 = vst [vmem:[%s336_s12 + $0x30] sm:$0xff] %v364_v6  ;;  %367 = vst [vmem:[%s336_s12 + $0x38] sm:$0xff] %v366_v7  ;;  %v370_v9 = vld [vmem:[%s3967_s30 + $0x88] sm:$0xff]  ;;  %v372_v10 = vld [vmem:[%s3967_s30 + $0x90] sm:$0xff] }
  0x14   : > { %369 = vst [vmem:[%s336_s12 + $0x40] sm:$0xff] %v368_v8  ;;  %v374_v11 = vld [vmem:[%s3967_s30 + $0x98] sm:$0xff]  ;;  %371 = vst [vmem:[%s336_s12 + $0x48] sm:$0xff] %v370_v9  ;;  %v376_v12 = vld [vmem:[%s3967_s30 + $0xa0] sm:$0xff] }
  0x15   : > { %373 = vst [vmem:[%s336_s12 + $0x50] sm:$0xff] %v372_v10  ;;  %375 = vst [vmem:[%s336_s12 + $0x58] sm:$0xff] %v374_v11  ;;  %v378_v13 = vld [vmem:[%s3967_s30 + $0xa8] sm:$0xff]  ;;  %v380_v14 = vld [vmem:[%s3967_s30 + $0xb0] sm:$0xff] }
  0x16   : > { %377 = vst [vmem:[%s336_s12 + $0x60] sm:$0xff] %v376_v12  ;;  %379 = vst [vmem:[%s336_s12 + $0x68] sm:$0xff] %v378_v13  ;;  %v382_v15 = vld [vmem:[%s3967_s30 + $0xb8] sm:$0xff] }
  0x17   : > { %381 = vst [vmem:[%s336_s12 + $0x70] sm:$0xff] %v380_v14  ;;  %383 = vst [vmem:[%s336_s12 + $0x78] sm:$0xff] %v382_v15 }
  0x18 PF: > { %p3644_p5 = scmp.ge.s32.totalorder %s3870_s19, 1  ;;  %p397_p6 = scmp.lt.s32.totalorder %s3870_s19, 3 }
  0x1a   : > { %p398_p7 = pnand %p3644_p5, %p397_p6 }
  0x1c   : > { %401 = sbr.rel (%p398_p7) target bundleno = 1099 (0x44b), region = 83 }
  0x21   : > { %s3646_s13 = sshll.u32 %s3637_s20, 4  ;;  %v5071_v16 = vmov 0   ;;  %v1531_v17 = vld [vmem:[%s5063_s4 + $0x10] sm:$0xff]  ;;  %vm535_vm0 = vcmask 1043456   ;;  %v4020_v33 = vld [vmem:[%s5062_s3] sm:$0xff]   ;;  %vm528_vm1 = vcmask 64512  }
  0x22   : > { %p450_p8 = scmp.lt.s32.totalorder %s3646_s13, 31  ;;  %616 = vmatprep.mubr.bf16.mxu0 %v5071_v16  ;;  %669 = vmatprep.mubr.bf16.mxu1 %v5071_v16  ;;  %v1532_v43 = vld [vmem:[%s5063_s4 + $0x18] sm:$0xff]  ;;  %v1529_v44 = vld [vmem:[%s5063_s4] sm:$0xff]  ;;  %v4045_v45 = vld [vmem:[%s5062_s3 + $0x8] sm:$0xff]   ;;  %s404_s19 = sand.u32 1, %s3862_s17   ;;  %vm1098_vm2 = vcmask 130048  }
  0x23   : > { %3790 = vset.pattern.permute.xlu0 %v5071_v16  ;;  %3791 = vset.pattern.permute.xlu1 %v5071_v16  ;;  %v1719_v46 = vld [vmem:[%s5065_s6 + $0x10] sm:$0xff]  ;;  %v1530_v48 = vld [vmem:[%s5063_s4 + $0x8] sm:$0xff]  ;;  %v1717_v50 = vld [vmem:[%s5065_s6] sm:$0xff]  ;;  %s3645_s25 = sshll.u32 %s404_s19, 7  ;;  %vm1751_vm3 = vcmask 261120  }
  0x24   : > { %s5122_s13 = smov (!%p450_p8, %s3646_s13), 31  ;;  %1545 = vperm.xlu0 %3790, %v1531_v17   ;;  %1535 = vperm.xlu1 %3791, %v1529_v44   ;;  %v1720_v52 = vld [vmem:[%s5065_s6 + $0x18] sm:$0xff]  ;;  %v3734_v56 = vld [vmem:[%s5065_s6 + $0x30] sm:$0xff]  ;;  %v1718_v61 = vld [vmem:[%s5065_s6 + $0x8] sm:$0xff]  ;;  %s4110_s12 = scalar_lea.vmem [#allocation2], %s3645_s25 }
  0x25   : > { %s3647_s16 = sshll.u32 %s5122_s13, 3  ;;  %v3732_v62 = vld [vmem:[%s5065_s6 + $0x20] sm:$0xff]  ;;  %v3735_v63 = vld [vmem:[%s5065_s6 + $0x38] sm:$0xff]  ;;  %v3733_v3 = vld [vmem:[%s5065_s6 + $0x28] sm:$0xff] }
  0x26   : > { %s4004_s22 = scalar_lea.vmem %s5060_s1, %s3647_s16  ;;  %v2845_v0 = vld [vmem:[%s5067_s8] sm:$0xff]  ;;  %v467_v9 = vld [vmem:[%s4110_s12 + $0x8] sm:$0xff]  ;;  %v468_v17 = vld [vmem:[%s4110_s12 + $0x10] sm:$0xff]  ;;  %s4903_s25 = scalar_lea.vmem %s5070_s11, %s3647_s16 }
  0x27   : > { %v487_v18 = vld [vmem:[%s4004_s22 + $0x8] sm:$0xff]  ;;  %v489_v19 = vld [vmem:[%s4004_s22 + $0x18] sm:$0xff]  ;;  %v486_v20 = vld [vmem:[%s4004_s22] sm:$0xff] }
  0x28   : > { %v503_v21 = vpack.c.bf16 %v487_v18, %v487_v18  ;;  %v505_v22 = vpack.c.bf16 %v489_v19, %v489_v19  ;;  %v502_v23 = vpack.c.bf16 %v486_v20, %v486_v20  ;;  %v488_v24 = vld [vmem:[%s4004_s22 + $0x10] sm:$0xff]  ;;  %v491_v25 = vld [vmem:[%s4004_s22 + $0x28] sm:$0xff]  ;;  %v493_v26 = vld [vmem:[%s4004_s22 + $0x38] sm:$0xff]  ;;  %1550 = vperm.xlu0 %3790, %v1532_v43   ;;  %1540 = vperm.xlu1 %3791, %v1530_v48  }
  0x29   : > { %v504_v27 = vpack.c.bf16 %v488_v24, %v488_v24  ;;  %v507_v28 = vpack.c.bf16 %v491_v25, %v491_v25  ;;  %v509_v29 = vpack.c.bf16 %v493_v26, %v493_v26  ;;  %v490_v30 = vld [vmem:[%s4004_s22 + $0x20] sm:$0xff]  ;;  %v492_v31 = vld [vmem:[%s4004_s22 + $0x30] sm:$0xff]  ;;  %v495_v36 = vld [vmem:[%s4004_s22 + $0x48] sm:$0xff] }
  0x2a   : > { %3652 = vmatprep.subr.msk.bf16.mxu0 %vm535_vm0, %v503_v21  ;;  %3655 = vmatprep.subr.msk.bf16.mxu1 %vm535_vm0, %v505_v22  ;;  %v537_v32 = vsel %vm535_vm0, %v502_v23, 0  ;;  %v506_v34 = vpack.c.bf16 %v490_v30, %v490_v30  ;;  %v508_v35 = vpack.c.bf16 %v492_v31, %v492_v31  ;;  %v497_v38 = vld [vmem:[%s4004_s22 + $0x58] sm:$0xff]  ;;  %v511_v40 = vpack.c.bf16 %v495_v36, %v495_v36  ;;  %v494_v47 = vld [vmem:[%s4004_s22 + $0x40] sm:$0xff]  ;;  %v496_v49 = vld [vmem:[%s4004_s22 + $0x50] sm:$0xff] }
  0x2b   : > { %599 = vmatpush1.bf16.msra.mxu0 %v537_v32  ;;  %v543_v37 = vsel %vm535_vm0, %v504_v27, 0  ;;  %v513_v42 = vpack.c.bf16 %v497_v38, %v497_v38  ;;  %v510_v51 = vpack.c.bf16 %v494_v47, %v494_v47  ;;  %v512_v53 = vpack.c.bf16 %v496_v49, %v496_v49  ;;  %v499_v54 = vld [vmem:[%s4004_s22 + $0x68] sm:$0xff]  ;;  %v501_v55 = vld [vmem:[%s4004_s22 + $0x78] sm:$0xff]  ;;  %v498_v1 = vld [vmem:[%s4004_s22 + $0x60] sm:$0xff] }
  0x2c   : > { %652 = vmatpush1.bf16.msra.mxu1 %v543_v37  ;;  %3658 = vmatprep.subr.msk.bf16.mxu0 %vm535_vm0, %v507_v28  ;;  %v549_v39 = vsel %vm535_vm0, %v506_v34, 0  ;;  %v555_v41 = vsel %vm535_vm0, %v508_v35, 0  ;;  %v515_v58 = vpack.c.bf16 %v499_v54, %v499_v54  ;;  %v517_v60 = vpack.c.bf16 %v501_v55, %v501_v55  ;;  %v500_v2 = vld [vmem:[%s4004_s22 + $0x70] sm:$0xff]  ;;  %v3509_v5 = vld [vmem:[%s5069_s10] sm:$0xff]  ;;  %v475_v10 = vld [vmem:[%s4110_s12 + $0x48] sm:$0xff] }
  0x2d   : > { %3661 = vmatprep.subr.msk.bf16.mxu1 %vm535_vm0, %v509_v29  ;;  %1733 = vperm.xlu0 %3790, %v1719_v46   ;;  %v561_v57 = vsel %vm535_vm0, %v510_v51, 0  ;;  %v567_v59 = vsel %vm535_vm0, %v512_v53, 0  ;;  %v514_v4 = vpack.c.bf16 %v498_v1, %v498_v1  ;;  %v516_v6 = vpack.c.bf16 %v500_v2, %v500_v2  ;;  %v466_v7 = vld [vmem:[%s4110_s12] sm:$0xff]  ;;  %v476_v18 = vld [vmem:[%s4110_s12 + $0x50] sm:$0xff]  ;;  %v469_v19 = vld [vmem:[%s4110_s12 + $0x18] sm:$0xff] }
  0x2e   : > { %3653 = vmatmul.mubr.msk.bf16.vlgmr.msra.gmra.mxu0 %vm528_vm1, %v4020_v33  ;;  %1738 = vperm.xlu1 %3791, %v1720_v52   ;;  %v474_v8 = vld [vmem:[%s4110_s12 + $0x40] sm:$0xff]  ;;  %v3681_v15 = vcombine.high %v467_v9, %v475_v10  ;;  %v477_v20 = vld [vmem:[%s4110_s12 + $0x58] sm:$0xff]  ;;  %v3680_v22 = vcombine.low %v467_v9, %v475_v10  ;;  %v3683_v23 = vcombine.high %v468_v17, %v476_v18  ;;  %v471_v28 = vld [vmem:[%s4110_s12 + $0x28] sm:$0xff] }
  0x2f   : > { %3656 = vmatmul.mubr.msk.bf16.vlgmr.msra.gmra.mxu1 %vm528_vm1, %v4020_v33  ;;  %626 = vmatprep.mubr.bf16.mxu0 %v5071_v16  ;;  %v3487_v11 = vld [vmem:[%s5068_s9] sm:$0xff]  ;;  %v573_v12 = vsel %vm535_vm0, %v514_v4, 0  ;;  %v3679_v13 = vcombine.high %v466_v7, %v474_v8  ;;  %v579_v14 = vsel %vm535_vm0, %v516_v6, 0  ;;  %v3678_v21 = vcombine.low %v466_v7, %v474_v8  ;;  %v479_v29 = vld [vmem:[%s4110_s12 + $0x68] sm:$0xff]  ;;  %v472_v35 = vld [vmem:[%s4110_s12 + $0x30] sm:$0xff] }
  0x30   : > { %679 = vmatprep.mubr.bf16.mxu1 %v5071_v16  ;;  %705 = vmatpush1.bf16.msra.mxu0 %v549_v39  ;;  %v3685_v24 = vcombine.high %v469_v19, %v477_v20  ;;  %v3794_v25 = vld [vmem:[%s5061_s2] sm:$0xff]   ;;  %v3682_v30 = vcombine.low %v468_v17, %v476_v18  ;;  %v3684_v31 = vcombine.low %v469_v19, %v477_v20  ;;  %v3795_v34 = vld [vmem:[%s5061_s2 + $0x8] sm:$0xff]   ;;  %v480_v36 = vld [vmem:[%s4110_s12 + $0x70] sm:$0xff] }
  0x31   : > { %758 = vmatpush1.bf16.msra.mxu1 %v555_v41  ;;  %3664 = vmatprep.subr.msk.bf16.mxu0 %vm535_vm0, %v511_v40  ;;  %v470_v26 = vld [vmem:[%s4110_s12 + $0x20] sm:$0xff]  ;;  %v473_v37 = vld [vmem:[%s4110_s12 + $0x38] sm:$0xff]  ;;  %v3688_v40 = vcombine.low %v471_v28, %v479_v29  ;;  %v3691_v41 = vcombine.high %v472_v35, %v480_v36  ;;  %v3690_v43 = vcombine.low %v472_v35, %v480_v36 }
  0x32   : > { %3667 = vmatprep.subr.msk.bf16.mxu1 %vm535_vm0, %v513_v42  ;;  %1723 = vperm.xlu0 %3790, %v1717_v50   ;;  %v478_v27 = vld [vmem:[%s4110_s12 + $0x60] sm:$0xff]  ;;  %v481_v38 = vld [vmem:[%s4110_s12 + $0x78] sm:$0xff] }
  0x33   : > { %1728 = vperm.xlu1 %3791, %v1718_v61   ;;  %v3687_v32 = vcombine.high %v470_v26, %v478_v27  ;;  %v3686_v39 = vcombine.low %v470_v26, %v478_v27  ;;  %v3693_v42 = vcombine.high %v473_v37, %v481_v38  ;;  %v3692_v44 = vcombine.low %v473_v37, %v481_v38 }
  0x36   : > { %3654 = vmatmul.mubr.msk.bf16.gmra.mxu0 %vm528_vm1, %v4045_v45  ;;  %2300 = vperm.xlu0 %3790, %v3734_v56  }
  0x37   : > { %3657 = vmatmul.mubr.msk.bf16.gmra.mxu1 %vm528_vm1, %v4045_v45  ;;  %722 = vmatprep.mubr.bf16.mxu0 %v5071_v16 }
  0x38   : > { %775 = vmatprep.mubr.bf16.mxu1 %v5071_v16  ;;  %2305 = vperm.xlu1 %3791, %v3735_v63  }
  0x3a   : > { %2290 = vperm.xlu0 %3790, %v3732_v62  }
  0x3c   : > { %2295 = vperm.xlu1 %3791, %v3733_v3  }
  0x3e   : > { %3659 = vmatmul.mubr.msk.bf16.vlgmr.msra.gmra.mxu0 %vm528_vm1, %v4020_v33  ;;  %2848 = vperm.xlu0 %3790, %v2845_v0  }
  0x3f   : > { %3662 = vmatmul.mubr.msk.bf16.vlgmr.msra.gmra.mxu1 %vm528_vm1, %v4020_v33  ;;  %732 = vmatprep.mubr.bf16.mxu0 %v5071_v16 }
  0x40   : > { %785 = vmatprep.mubr.bf16.mxu1 %v5071_v16  ;;  %811 = vmatpush1.bf16.msra.mxu0 %v561_v57 }
  0x41   : > { %864 = vmatpush1.bf16.msra.mxu1 %v567_v59  ;;  %3670 = vmatprep.subr.msk.bf16.mxu0 %vm535_vm0, %v515_v58 }
  0x42   : > { %3673 = vmatprep.subr.msk.bf16.mxu1 %vm535_vm0, %v517_v60  ;;  %3512 = vperm.xlu0 %3790, %v3509_v5  }
  0x43   : > { %3490 = vperm.xlu1 %3791, %v3487_v11  }
  0x46   : > { %3660 = vmatmul.mubr.msk.bf16.gmra.mxu0 %vm528_vm1, %v4045_v45 }
  0x47   : > { %3663 = vmatmul.mubr.msk.bf16.gmra.mxu1 %vm528_vm1, %v4045_v45  ;;  %828 = vmatprep.mubr.bf16.mxu0 %v5071_v16 }
  0x48   : > { %881 = vmatprep.mubr.bf16.mxu1 %v5071_v16 }
  0x4e   : > { %3665 = vmatmul.mubr.msk.bf16.vlgmr.msra.gmra.mxu0 %vm528_vm1, %v4020_v33 }
  0x4f   : > { %3668 = vmatmul.mubr.msk.bf16.vlgmr.msra.gmra.mxu1 %vm528_vm1, %v4020_v33  ;;  %838 = vmatprep.mubr.bf16.mxu0 %v5071_v16 }
  0x50   : > { %891 = vmatprep.mubr.bf16.mxu1 %v5071_v16  ;;  %917 = vmatpush1.bf16.msra.mxu0 %v573_v12 }
  0x51   : > { %970 = vmatpush1.bf16.msra.mxu1 %v579_v14  ;;  %1119 = vmatprep.subr.bf16.mxu0 %v3679_v13 }
  0x52   : > { %1172 = vmatprep.subr.bf16.mxu1 %v3681_v15 }
  0x56   : > { %3666 = vmatmul.mubr.msk.bf16.gmra.mxu0 %vm528_vm1, %v4045_v45 }
  0x57   : > { %3669 = vmatmul.mubr.msk.bf16.gmra.mxu1 %vm528_vm1, %v4045_v45  ;;  %934 = vmatprep.mubr.bf16.mxu0 %v5071_v16 }
  0x58   : > { %987 = vmatprep.mubr.bf16.mxu1 %v5071_v16 }
  0x5e   : > { %3671 = vmatmul.mubr.msk.bf16.vlgmr.msra.gmra.mxu0 %vm528_vm1, %v4020_v33 }
  0x5f   : > { %3674 = vmatmul.mubr.msk.bf16.vlgmr.msra.gmra.mxu1 %vm528_vm1, %v4020_v33  ;;  %944 = vmatprep.mubr.bf16.mxu0 %v5071_v16  ;;  %v3689_v33 = vcombine.high %v471_v28, %v479_v29 }
  0x60   : > { %997 = vmatprep.mubr.bf16.mxu1 %v5071_v16  ;;  %1120 = vmatpush1.bf16.msra.mxu0 %v3678_v21 }
  0x61   : > { %1173 = vmatpush1.bf16.msra.mxu1 %v3680_v22  ;;  %1225 = vmatprep.subr.bf16.mxu0 %v3683_v23 }
  0x62   : > { %1278 = vmatprep.subr.bf16.mxu1 %v3685_v24 }
  0x66   : > { %3672 = vmatmul.mubr.msk.bf16.gmra.mxu0 %vm528_vm1, %v4045_v45 }
  0x67   : > { %3675 = vmatmul.mubr.msk.bf16.gmra.mxu1 %vm528_vm1, %v4045_v45  ;;  %1137 = vmatprep.mubr.bf16.mxu0 %v5071_v16 }
  0x68   : > { %1190 = vmatprep.mubr.bf16.mxu1 %v5071_v16 }
  0x6e   : > { %3694 = vmatmul.mubr.msk.bf16.vlgmr.msra.gmra.mxu0 %vm1098_vm2, %v3794_v25 }
  0x6f   : > { %3696 = vmatmul.mubr.msk.bf16.vlgmr.msra.gmra.mxu1 %vm1098_vm2, %v3794_v25  ;;  %1147 = vmatprep.mubr.bf16.mxu0 %v5071_v16 }
  0x70   : > { %1200 = vmatprep.mubr.bf16.mxu1 %v5071_v16  ;;  %1226 = vmatpush1.bf16.msra.mxu0 %v3682_v30 }
  0x71   : > { %1279 = vmatpush1.bf16.msra.mxu1 %v3684_v31  ;;  %1331 = vmatprep.subr.bf16.mxu0 %v3687_v32 }
  0x72   : > { %1384 = vmatprep.subr.bf16.mxu1 %v3689_v33 }
  0x76   : > { %3695 = vmatmul.mubr.msk.bf16.gmra.mxu0 %vm1098_vm2, %v3795_v34 }
  0x77   : > { %3697 = vmatmul.mubr.msk.bf16.gmra.mxu1 %vm1098_vm2, %v3795_v34  ;;  %1243 = vmatprep.mubr.bf16.mxu0 %v5071_v16 }
  0x78   : > { %1296 = vmatprep.mubr.bf16.mxu1 %v5071_v16 }
  0x7e   : > { %3698 = vmatmul.mubr.msk.bf16.vlgmr.msra.gmra.mxu0 %vm1098_vm2, %v3794_v25 }
  0x7f   : > { %3700 = vmatmul.mubr.msk.bf16.vlgmr.msra.gmra.mxu1 %vm1098_vm2, %v3794_v25  ;;  %1253 = vmatprep.mubr.bf16.mxu0 %v5071_v16 }
  0x80   : > { %1306 = vmatprep.mubr.bf16.mxu1 %v5071_v16  ;;  %1332 = vmatpush1.bf16.msra.mxu0 %v3686_v39 }
  0x81   : > { %1385 = vmatpush1.bf16.msra.mxu1 %v3688_v40  ;;  %1437 = vmatprep.subr.bf16.mxu0 %v3691_v41 }
  0x82   : > { %1490 = vmatprep.subr.bf16.mxu1 %v3693_v42 }
  0x86   : > { %3699 = vmatmul.mubr.msk.bf16.gmra.mxu0 %vm1098_vm2, %v3795_v34 }
  0x87   : > { %3701 = vmatmul.mubr.msk.bf16.gmra.mxu1 %vm1098_vm2, %v3795_v34  ;;  %1349 = vmatprep.mubr.bf16.mxu0 %v5071_v16 }
  0x88   : > { %1402 = vmatprep.mubr.bf16.mxu1 %v5071_v16 }
  0x8e   : > { %3702 = vmatmul.mubr.msk.bf16.vlgmr.msra.gmra.mxu0 %vm1098_vm2, %v3794_v25 }
  0x8f   : > { %3704 = vmatmul.mubr.msk.bf16.vlgmr.msra.gmra.mxu1 %vm1098_vm2, %v3794_v25  ;;  %1359 = vmatprep.mubr.bf16.mxu0 %v5071_v16 }
  0x90   : > { %1412 = vmatprep.mubr.bf16.mxu1 %v5071_v16  ;;  %1438 = vmatpush1.bf16.msra.mxu0 %v3690_v43 }
  0x91   : > { %1491 = vmatpush1.bf16.msra.mxu1 %v3692_v44 }
  0x96   : > { %3703 = vmatmul.mubr.msk.bf16.gmra.mxu0 %vm1098_vm2, %v3795_v34 }
  0x97   : > { %3705 = vmatmul.mubr.msk.bf16.gmra.mxu1 %vm1098_vm2, %v3795_v34  ;;  %1455 = vmatprep.mubr.bf16.mxu0 %v5071_v16 }
  0x98   : > { %1508 = vmatprep.mubr.bf16.mxu1 %v5071_v16 }
  0x9e   : > { %3706 = vmatmul.mubr.msk.bf16.vlgmr.msra.gmra.mxu0 %vm1098_vm2, %v3794_v25 }
  0x9f   : > { %3708 = vmatmul.mubr.msk.bf16.vlgmr.msra.gmra.mxu1 %vm1098_vm2, %v3794_v25  ;;  %1465 = vmatprep.mubr.bf16.mxu0 %v5071_v16 }
  0xa0   : > { %1518 = vmatprep.mubr.bf16.mxu1 %v5071_v16 }
  0xa6   : > { %3707 = vmatmul.mubr.msk.bf16.gmra.mxu0 %vm1098_vm2, %v3795_v34 }
  0xa7   : > { %3709 = vmatmul.mubr.msk.bf16.gmra.mxu1 %vm1098_vm2, %v3795_v34  ;;  %1790 = vmatprep.mubr.bf16.mxu0 %v5071_v16 }
  0xa8   : > { %1843 = vmatprep.mubr.bf16.mxu1 %v5071_v16 }
  0xee   : > { %v4195_v45 = vpop.f32.mrf.mxu0 }
  0xef   : > { %v4197_v46 = vpop.f32.mrf.mxu1 }
  0xf0   : > { %v4199_v47 = vpop.f32.mrf.mxu0 }
  0xf1   : > { %v4201_v48 = vpop.f32.mrf.mxu1 }
  0xf2   : > { %v4203_v49 = vpop.f32.mrf.mxu0 }
  0xf3   : > { %v4205_v50 = vpop.f32.mrf.mxu1 }
  0xf4   : > { %v4207_v51 = vpop.f32.mrf.mxu0 }
  0xf5   : > { %v4209_v52 = vpop.f32.mrf.mxu1 }
  0xf6   : > { %v4211_v53 = vpop.f32.mrf.mxu0 }
  0xf7   : > { %v4213_v54 = vpop.f32.mrf.mxu1 }
  0xf8   : > { %v4215_v55 = vpop.f32.mrf.mxu0 }
  0xf9   : > { %v4217_v56 = vpop.f32.mrf.mxu1 }
  0xfa   : > { %v4219_v57 = vpop.f32.mrf.mxu0 }
  0xfb   : > { %v4221_v58 = vpop.f32.mrf.mxu1 }
  0xfc   : > { %v4223_v59 = vpop.f32.mrf.mxu0 }
  0xfd   : > { %v4225_v60 = vpop.f32.mrf.mxu1 }
  0xfe   : > { %v4227_v61 = vpop.f32.mrf.mxu0 }
  0xff   : > { %v4229_v62 = vpop.f32.mrf.mxu1 }
 0x100   : > { %v4231_v63 = vpop.f32.mrf.mxu0 }
 0x101   : > { %v4233_v0 = vpop.f32.mrf.mxu1 }
 0x102   : > { %v4235_v1 = vpop.f32.mrf.mxu0 }
 0x103   : > { %v4237_v2 = vpop.f32.mrf.mxu1 }
 0x104   : > { %v4239_v3 = vpop.f32.mrf.mxu0 }
 0x105   : > { %v4241_v4 = vpop.f32.mrf.mxu1 }
 0x106   : > { %v4243_v5 = vpop.f32.mrf.mxu0 }
 0x107   : > { %v4245_v6 = vpop.f32.mrf.mxu1 }
 0x108   : > { %v4247_v7 = vpop.f32.mrf.mxu0 }
 0x109   : > { %v4249_v8 = vpop.f32.mrf.mxu1 }
 0x10a   : > { %v4251_v9 = vpop.f32.mrf.mxu0 }
 0x10b   : > { %v4253_v10 = vpop.f32.mrf.mxu1 }
 0x10c   : > { %v4255_v11 = vpop.f32.mrf.mxu0 }
 0x10d   : > { %v4257_v12 = vpop.f32.mrf.mxu1 }
 0x10e   : > { %v4259_v13 = vpop.f32.mrf.mxu0 }
 0x10f   : > { %v4261_v14 = vpop.f32.mrf.mxu1 }
 0x110   : > { %v4263_v15 = vpop.f32.mrf.mxu0 }
 0x111   : > { %v4265_v17 = vpop.f32.mrf.mxu1 }
 0x112   : > { %5073 = vst [vmem:[#allocation3_spill] sm:$0xff] %v4265_v17  ;;  %v4267_v18 = vpop.f32.mrf.mxu0 }
 0x113   : > { %v4269_v19 = vpop.f32.mrf.mxu1 }
 0x114   : > { %v4271_v20 = vpop.f32.mrf.mxu0 }
 0x115   : > { %v4273_v21 = vpop.f32.mrf.mxu1 }
 0x116   : > { %v4275_v22 = vpop.f32.mrf.mxu0 }
 0x117   : > { %v4277_v23 = vpop.f32.mrf.mxu1 }
 0x118   : > { %v4279_v24 = vpop.f32.mrf.mxu0 }
 0x119   : > { %v4281_v25 = vpop.f32.mrf.mxu1 }
 0x11a   : > { %5074 = vst [vmem:[#allocation4_spill] sm:$0xff] %v4281_v25  ;;  %v4283_v26 = vpop.f32.mrf.mxu0 }
 0x11b   : > { %5075 = vst [vmem:[#allocation5_spill] sm:$0xff] %v4283_v26  ;;  %v4285_v27 = vpop.f32.mrf.mxu1 }
 0x11c   : > { %5076 = vst [vmem:[#allocation6_spill] sm:$0xff] %v4285_v27  ;;  %v4287_v28 = vpop.f32.mrf.mxu0 }
 0x11d   : > { %5077 = vst [vmem:[#allocation7_spill] sm:$0xff] %v4287_v28  ;;  %v4289_v29 = vpop.f32.mrf.mxu1 }
 0x11e   : > { %5078 = vst [vmem:[#allocation8_spill] sm:$0xff] %v4289_v29  ;;  %v4291_v30 = vpop.f32.mrf.mxu0 }
 0x11f   : > { %5079 = vst [vmem:[#allocation9_spill] sm:$0xff] %v4291_v30  ;;  %v4293_v31 = vpop.f32.mrf.mxu1  ;;  %v4334_v30 = vpop.permute.xlu0 %1545 }
 0x120   : > { %5080 = vst [vmem:[#allocation10_spill] sm:$0xff] %v4293_v31  ;;  %v4295_v32 = vpop.f32.mrf.mxu0 }
 0x121   : > { %5081 = vst [vmem:[#allocation11_spill] sm:$0xff] %v4295_v32  ;;  %v4297_v33 = vpop.f32.mrf.mxu1 }
 0x122   : > { %5082 = vst [vmem:[#allocation12_spill] sm:$0xff] %v4297_v33  ;;  %v4299_v34 = vpop.f32.mrf.mxu0  ;;  %v4323_v33 = vpop.permute.xlu1 %1535 }
 0x123   : > { %5083 = vst [vmem:[#allocation13_spill] sm:$0xff] %v4299_v34  ;;  %v4301_v35 = vpop.f32.mrf.mxu1 }
 0x124   : > { %5084 = vst [vmem:[#allocation14_spill] sm:$0xff] %v4301_v35  ;;  %v4303_v36 = vpop.f32.mrf.mxu0 }
 0x125   : > { %5085 = vst [vmem:[#allocation15_spill] sm:$0xff] %v4303_v36  ;;  %v4305_v37 = vpop.f32.mrf.mxu1 }
 0x126   : > { %5086 = vst [vmem:[#allocation16_spill] sm:$0xff] %v4305_v37  ;;  %v4307_v38 = vpop.f32.mrf.mxu0  ;;  %v4329_v34 = vpop.permute.xlu1 %1540 }
 0x127   : > { %5087 = vst [vmem:[#allocation17_spill] sm:$0xff] %v4307_v38  ;;  %v4309_v39 = vpop.f32.mrf.mxu1 }
 0x128   : > { %5088 = vst [vmem:[#allocation18_spill] sm:$0xff] %v4309_v39  ;;  %v4311_v40 = vpop.f32.mrf.mxu0 }
 0x129   : > { %5089 = vst [vmem:[#allocation19_spill] sm:$0xff] %v4311_v40  ;;  %v4313_v41 = vpop.f32.mrf.mxu1 }
 0x12a   : > { %5090 = vst [vmem:[#allocation20_spill] sm:$0xff] %v4313_v41  ;;  %v4315_v42 = vpop.f32.mrf.mxu0 }
 0x12b   : > { %5091 = vst [vmem:[#allocation21_spill] sm:$0xff] %v4315_v42  ;;  %v4317_v43 = vpop.f32.mrf.mxu1 }
 0x12c   : > { %5092 = vst [vmem:[#allocation22_spill] sm:$0xff] %v4317_v43  ;;  %v4319_v44 = vpop.f32.mrf.mxu0 }
 0x12d   : > { %5093 = vst [vmem:[#allocation23_spill] sm:$0xff] %v4319_v44  ;;  %v4321_v16 = vpop.f32.mrf.mxu1 }
 0x12e   : > { %5094 = vst [vmem:[#allocation24_spill] sm:$0xff] %v4321_v16  ;;  %v1139_v32 = vpop.f32.mrf.mxu0 }
 0x12f   : > { %v1140_v37 = vadd.f32 %v1139_v32, %v4195_v45  ;;  %v1192_v36 = vpop.f32.mrf.mxu1 }
 0x130   : > { %v1193_v39 = vadd.f32 %v1192_v36, %v4197_v46  ;;  %v1141_v38 = vpop.f32.mrf.mxu0 }
 0x131   : > { %v1194_v40 = vpop.f32.mrf.mxu1  ;;  %v1553_v41 = vadd.f32 %v4323_v33, %v1140_v37  ;;  %v1142_v37 = vadd.f32 %v1141_v38, %v4199_v47 }
 0x132   : > { %v1143_v35 = vpop.f32.mrf.mxu0  ;;  %v1555_v16 = vadd.f32 %v4323_v33, %v1193_v39  ;;  %v1195_v39 = vadd.f32 %v1194_v40, %v4201_v48 }
 0x133   : > { %v1144_v42 = vadd.f32 %v1143_v35, %v4203_v49  ;;  %v1196_v43 = vpop.f32.mrf.mxu1  ;;  %v1617_v29 = vmax.f32 %v1553_v41, 0.0 }
 0x134   : > { %v1197_v44 = vadd.f32 %v1196_v43, %v4205_v50  ;;  %v1145_v31 = vpop.f32.mrf.mxu0  ;;  %v1619_v27 = vmax.f32 %v1555_v16, 0.0 }
 0x135   : > { %v1569_v45 = vadd.f32 %v4329_v34, %v1144_v42  ;;  %v1198_v32 = vpop.f32.mrf.mxu1  ;;  %v1146_v17 = vadd.f32 %v1145_v31, %v4207_v51  ;;  %v1556_v51 = vadd.f32 %v4323_v33, %v1195_v39 }
 0x136   : > { %v1571_v46 = vadd.f32 %v4329_v34, %v1197_v44  ;;  %v1149_v36 = vpop.f32.mrf.mxu0  ;;  %v1199_v47 = vadd.f32 %v1198_v32, %v4209_v52 }
 0x137   : > { %v1633_v49 = vmax.f32 %v1569_v45, 0.0  ;;  %v1150_v35 = vadd.f32 %v1149_v36, %v4211_v53  ;;  %v1202_v28 = vpop.f32.mrf.mxu1  ;;  %v1570_v52 = vadd.f32 %v4329_v34, %v1146_v17 }
 0x138   : > { %v1635_v50 = vmax.f32 %v1571_v46, 0.0  ;;  %v1203_v43 = vadd.f32 %v1202_v28, %v4213_v54  ;;  %v1151_v42 = vpop.f32.mrf.mxu0  ;;  %v4351_v28 = vpop.permute.xlu0 %1550  ;;  %v1572_v32 = vadd.f32 %v4329_v34, %v1199_v47 }
 0x139   : > { %v4341_v26 = vpack.c.bf16 %v1633_v49, %v1617_v29  ;;  %v1152_v44 = vadd.f32 %v1151_v42, %v4215_v55  ;;  %v1204_v41 = vpop.f32.mrf.mxu1  ;;  %v1585_v48 = vadd.f32 %v4334_v30, %v1150_v35  ;;  %v1554_v29 = vadd.f32 %v4323_v33, %v1142_v37 }
 0x13a   : > { %v4345_v25 = vpack.c.bf16 %v1635_v50, %v1619_v27  ;;  %v1205_v53 = vadd.f32 %v1204_v41, %v4217_v56  ;;  %v1153_v16 = vpop.f32.mrf.mxu0  ;;  %v1587_v55 = vadd.f32 %v4334_v30, %v1203_v43  ;;  %v1634_v47 = vmax.f32 %v1570_v52, 0.0 }
 0x13b   : > { %v1154_v38 = vadd.f32 %v1153_v16, %v4219_v57  ;;  %v1206_v54 = vpop.f32.mrf.mxu1  ;;  %v1586_v56 = vadd.f32 %v4334_v30, %v1152_v44 }
 0x13c   : > { %v1207_v27 = vadd.f32 %v1206_v54, %v4221_v58  ;;  %v1155_v31 = vpop.f32.mrf.mxu0  ;;  %v1588_v46 = vadd.f32 %v4334_v30, %v1205_v53  ;;  %v1649_v58 = vmax.f32 %v1585_v48, 0.0  ;;  %v1651_v43 = vmax.f32 %v1587_v55, 0.0 }
 0x13d   : > { %v1601_v40 = vadd.f32 %v4351_v28, %v1154_v38  ;;  %v1156_v57 = vadd.f32 %v1155_v31, %v4223_v59  ;;  %v1208_v45 = vpop.f32.mrf.mxu1  ;;  %v1650_v53 = vmax.f32 %v1586_v56, 0.0  ;;  %v1636_v54 = vmax.f32 %v1572_v32, 0.0 }
 0x13e   : > { %v1603_v36 = vadd.f32 %v4351_v28, %v1207_v27  ;;  %v1209_v37 = vadd.f32 %v1208_v45, %v4225_v60  ;;  %v1245_v49 = vpop.f32.mrf.mxu0  ;;  %v1652_v48 = vmax.f32 %v1588_v46, 0.0 }
 0x13f   : > { %v1665_v35 = vmax.f32 %v1601_v40, 0.0  ;;  %v1602_v17 = vadd.f32 %v4351_v28, %v1156_v57  ;;  %v1246_v39 = vadd.f32 %v1245_v49, %v4227_v61  ;;  %v1298_v50 = vpop.f32.mrf.mxu1  ;;  %v1618_v57 = vmax.f32 %v1554_v29, 0.0 }
 0x140   : > { %v1667_v42 = vmax.f32 %v1603_v36, 0.0  ;;  %v1604_v59 = vadd.f32 %v4351_v28, %v1209_v37  ;;  %v1299_v44 = vadd.f32 %v1298_v50, %v4229_v62  ;;  %v1247_v41 = vpop.f32.mrf.mxu0  ;;  %v1620_v37 = vmax.f32 %v1556_v51, 0.0 }
 0x141   : > { %v1701_v16 = vpack.c.bf16 %v1665_v35, %v1649_v58  ;;  %v1666_v38 = vmax.f32 %v1602_v17, 0.0  ;;  %v1300_v60 = vpop.f32.mrf.mxu1  ;;  %v1557_v61 = vadd.f32 %v4323_v33, %v1246_v39  ;;  %v1686_v58 = vpack.c.bf16 %v1634_v47, %v1618_v57 }
 0x142   : > { %v1703_v27 = vpack.c.bf16 %v1667_v42, %v1651_v43  ;;  %v1668_v31 = vmax.f32 %v1604_v59, 0.0  ;;  %v1249_v40 = vpop.f32.mrf.mxu0  ;;  %v1559_v62 = vadd.f32 %v4323_v33, %v1299_v44  ;;  %v1248_v29 = vadd.f32 %v1247_v41, %v4231_v63 }
 0x143   : > { %v1250_v55 = vadd.f32 %v1249_v40, %v4235_v1  ;;  %v1302_v45 = vpop.f32.mrf.mxu1  ;;  %v1702_v36 = vpack.c.bf16 %v1666_v38, %v1650_v53  ;;  %v1688_v17 = vpack.c.bf16 %v1636_v54, %v1620_v37  ;;  %v1621_v51 = vmax.f32 %v1557_v61, 0.0 }
 0x144   : > { %v1303_v52 = vadd.f32 %v1302_v45, %v4237_v2  ;;  %v1251_v56 = vpop.f32.mrf.mxu0  ;;  %v1704_v49 = vpack.c.bf16 %v1668_v31, %v1652_v48  ;;  %v1301_v39 = vadd.f32 %v1300_v60, %v4233_v0  ;;  %v1623_v42 = vmax.f32 %v1559_v62, 0.0 }
 0x145   : > { %v1573_v32 = vadd.f32 %v4329_v34, %v1250_v55  ;;  %v1304_v46 = vpop.f32.mrf.mxu1  ;;  %1770 = vmatprep.subr.bf16.mxu0 %v1702_v36  ;;  %v1252_v44 = vadd.f32 %v1251_v56, %v4239_v3  ;;  %v5095_v37 = vmov 0  }
 0x146   : > { %v1575_v35 = vadd.f32 %v4329_v34, %v1303_v52  ;;  %1823 = vmatprep.subr.bf16.mxu1 %v1704_v49  ;;  %v1255_v1 = vpop.f32.mrf.mxu0  ;;  %1771 = vmatpush1.bf16.msra.mxu0 %v1701_v16  ;;  %v1305_v53 = vadd.f32 %v1304_v46, %v4241_v4  ;;  %v1560_v48 = vadd.f32 %v4323_v33, %v1301_v39 }
 0x147   : > { %v1637_v50 = vmax.f32 %v1573_v32, 0.0  ;;  %v1256_v2 = vadd.f32 %v1255_v1, %v4243_v5  ;;  %v1308_v43 = vpop.f32.mrf.mxu1  ;;  %1824 = vmatpush1.bf16.msra.mxu1 %v1703_v27  ;;  %1772 = vmatprep.subr.bf16.mxu0 %v1686_v58  ;;  %v4387_v5 = vld [vmem:[%s5064_s5] sm:$0xff]   ;;  %v1574_v27 = vadd.f32 %v4329_v34, %v1252_v44 }
 0x148   : > { %v1639_v59 = vmax.f32 %v1575_v35, 0.0  ;;  %v1309_v63 = vadd.f32 %v1308_v43, %v4245_v6  ;;  %1825 = vmatprep.subr.bf16.mxu1 %v1688_v17  ;;  %v1257_v41 = vpop.f32.mrf.mxu0  ;;  %v4394_v6 = vadd.f32 %v4323_v33, %v1248_v29  ;;  %v1576_v40 = vadd.f32 %v4329_v34, %v1305_v53 }
 0x149   : > { %v4380_v47 = vpack.c.bf16 %v1637_v50, %v1621_v51  ;;  %v1258_v0 = vadd.f32 %v1257_v41, %v4247_v7  ;;  %v1310_v16 = vpop.f32.mrf.mxu1  ;;  %v1589_v4 = vadd.f32 %v4334_v30, %v1256_v2  ;;  %v1638_v35 = vmax.f32 %v1574_v27, 0.0  ;;  %v4423_v50 = vld [vmem:[%s5064_s5 + $0x8] sm:$0xff]  }
 0x14a   : > { %v4389_v38 = vpack.c.bf16 %v1639_v59, %v1623_v42  ;;  %v1311_v3 = vadd.f32 %v1310_v16, %v4249_v8  ;;  %v1259_v60 = vpop.f32.mrf.mxu0  ;;  %1773 = vmatpush1.bf16.msra.mxu0 %v4341_v26  ;;  %v1591_v8 = vadd.f32 %v4334_v30, %v1309_v63  ;;  %v1622_v44 = vmax.f32 %v4394_v6, 0.0 }
 0x14b   : > { %v1260_v7 = vadd.f32 %v1259_v60, %v4251_v9  ;;  %v1312_v54 = vpop.f32.mrf.mxu1  ;;  %1826 = vmatpush1.bf16.msra.mxu1 %v4345_v25  ;;  %v1590_v57 = vadd.f32 %v4334_v30, %v1258_v0  ;;  %v1653_v62 = vmax.f32 %v1589_v4, 0.0  ;;  %v1624_v0 = vmax.f32 %v1560_v48, 0.0 }
 0x14c   : > { %v1313_v31 = vadd.f32 %v1312_v54, %v4253_v10  ;;  %v1261_v26 = vpop.f32.mrf.mxu0  ;;  %v1592_v25 = vadd.f32 %v4334_v30, %v1311_v3  ;;  %v1655_v32 = vmax.f32 %v1591_v8, 0.0  ;;  %v1690_v48 = vpack.c.bf16 %v1638_v35, %v1622_v44 }
 0x14d   : > { %v1605_v61 = vadd.f32 %v4351_v28, %v1260_v7  ;;  %v1262_v9 = vadd.f32 %v1261_v26, %v4255_v11  ;;  %v1314_v55 = vpop.f32.mrf.mxu1  ;;  %3712 = vmatmul.mubr.msk.bf16.vlgmr.msra.gmra.mxu0 %vm1751_vm3, %v4387_v5  ;;  %v1654_v1 = vmax.f32 %v1590_v57, 0.0 }
 0x14e   : > { %v1607_v45 = vadd.f32 %v4351_v28, %v1313_v31  ;;  %v1315_v36 = vadd.f32 %v1314_v55, %v4257_v12  ;;  %3714 = vmatmul.mubr.msk.bf16.vlgmr.msra.gmra.mxu1 %vm1751_vm3, %v4387_v5  ;;  %v1351_v10 = vpop.f32.mrf.mxu0  ;;  %1800 = vmatprep.mubr.bf16.mxu0 %v5095_v37  ;;  %v1656_v2 = vmax.f32 %v1592_v25, 0.0 }
 0x14f   : > { %v1669_v52 = vmax.f32 %v1605_v61, 0.0  ;;  %v1606_v11 = vadd.f32 %v4351_v28, %v1262_v9  ;;  %v1352_v56 = vadd.f32 %v1351_v10, %v4259_v13  ;;  %v1404_v49 = vpop.f32.mrf.mxu1  ;;  %1853 = vmatprep.mubr.bf16.mxu1 %v5095_v37  ;;  %v1640_v13 = vmax.f32 %v1576_v40, 0.0 }
 0x150   : > { %v1671_v46 = vmax.f32 %v1607_v45, 0.0  ;;  %v1608_v58 = vadd.f32 %v4351_v28, %v1315_v36  ;;  %v1405_v12 = vadd.f32 %v1404_v49, %v4261_v14  ;;  %v1353_v29 = vpop.f32.mrf.mxu0  ;;  %v5098_v49 = vld [vmem:[#allocation5_spill] sm:$0xff] }
 0x151   : > { %v1705_v17 = vpack.c.bf16 %v1669_v52, %v1653_v62  ;;  %v1670_v51 = vmax.f32 %v1606_v11, 0.0  ;;  %v1406_v39 = vpop.f32.mrf.mxu1  ;;  %v1561_v14 = vadd.f32 %v4323_v33, %v1352_v56  ;;  %v1692_v27 = vpack.c.bf16 %v1640_v13, %v1624_v0  ;;  %v5096_v62 = vld [vmem:[#allocation4_spill] sm:$0xff] }
 0x152   : > { %v1707_v43 = vpack.c.bf16 %v1671_v46, %v1655_v32  ;;  %v1672_v42 = vmax.f32 %v1608_v58, 0.0  ;;  %v1355_v59 = vpop.f32.mrf.mxu0  ;;  %v1563_v16 = vadd.f32 %v4323_v33, %v1405_v12  ;;  %v5099_v12 = vld [vmem:[#allocation6_spill] sm:$0xff] }
 0x153   : > { %v1356_v63 = vadd.f32 %v1355_v59, %v4267_v18  ;;  %v1408_v41 = vpop.f32.mrf.mxu1  ;;  %v1706_v53 = vpack.c.bf16 %v1670_v51, %v1654_v1  ;;  %v1625_v8 = vmax.f32 %v1561_v14, 0.0 }
 0x154   : > { %v1409_v3 = vadd.f32 %v1408_v41, %v4269_v19  ;;  %v1357_v60 = vpop.f32.mrf.mxu0  ;;  %v1708_v4 = vpack.c.bf16 %v1672_v42, %v1656_v2  ;;  %v1354_v19 = vadd.f32 %v1353_v29, %v4263_v15  ;;  %v1627_v57 = vmax.f32 %v1563_v16, 0.0  ;;  %v5102_v41 = vld [vmem:[#allocation9_spill] sm:$0xff] }
 0x155   : > { %v1577_v7 = vadd.f32 %v4329_v34, %v1356_v63  ;;  %v1410_v54 = vpop.f32.mrf.mxu1  ;;  %3713 = vmatmul.mubr.msk.bf16.gmra.mxu0 %vm1751_vm3, %v4423_v50  ;;  %1876 = vmatprep.subr.bf16.mxu0 %v1706_v53  ;;  %v1358_v9 = vadd.f32 %v1357_v60, %v4271_v20 }
 0x156   : > { %v1579_v6 = vadd.f32 %v4329_v34, %v1409_v3  ;;  %3715 = vmatmul.mubr.msk.bf16.gmra.mxu1 %vm1751_vm3, %v4423_v50  ;;  %1929 = vmatprep.subr.bf16.mxu1 %v1708_v4  ;;  %v1361_v18 = vpop.f32.mrf.mxu0  ;;  %v1411_v36 = vadd.f32 %v1410_v54, %v4273_v21  ;;  %v1562_v21 = vadd.f32 %v4323_v33, %v1354_v19  ;;  %v5103_v4 = vld [vmem:[#allocation10_spill] sm:$0xff] }
 0x157   : > { %v1641_v31 = vmax.f32 %v1577_v7, 0.0  ;;  %v1362_v26 = vadd.f32 %v1361_v18, %v4275_v22  ;;  %v1414_v40 = vpop.f32.mrf.mxu1  ;;  %1877 = vmatpush1.bf16.msra.mxu0 %v1705_v17  ;;  %1930 = vmatpush1.bf16.msra.mxu1 %v1707_v43  ;;  %v5101_v43 = vld [vmem:[#allocation8_spill] sm:$0xff] }
 0x158   : > { %v1643_v61 = vmax.f32 %v1579_v6, 0.0  ;;  %v1415_v55 = vadd.f32 %v1414_v40, %v4277_v23  ;;  %1878 = vmatprep.subr.bf16.mxu0 %v1690_v48  ;;  %1931 = vmatprep.subr.bf16.mxu1 %v1692_v27  ;;  %v1363_v25 = vpop.f32.mrf.mxu0  ;;  %v5097_v23 = vld [vmem:[#allocation3_spill] sm:$0xff]  ;;  %v1580_v1 = vadd.f32 %v4329_v34, %v1411_v36 }
 0x159   : > { %v4440_v45 = vpack.c.bf16 %v1641_v31, %v1625_v8  ;;  %v1364_v15 = vadd.f32 %v1363_v25, %v4279_v24  ;;  %v1416_v10 = vpop.f32.mrf.mxu1  ;;  %1896 = vmatprep.mubr.bf16.mxu0 %v5095_v37  ;;  %1949 = vmatprep.mubr.bf16.mxu1 %v5095_v37  ;;  %v1407_v11 = vadd.f32 %v1406_v39, %v5097_v23  ;;  %v5100_v39 = vld [vmem:[#allocation7_spill] sm:$0xff] }
 0x15a   : > { %v4446_v22 = vpack.c.bf16 %v1643_v61, %v1627_v57  ;;  %v1417_v20 = vadd.f32 %v1416_v10, %v5096_v62  ;;  %v1365_v52 = vpop.f32.mrf.mxu0  ;;  %v1593_v56 = vadd.f32 %v4334_v30, %v1362_v26  ;;  %v1578_v24 = vadd.f32 %v4329_v34, %v1358_v9 }
 0x15b   : > { %v1366_v32 = vadd.f32 %v1365_v52, %v5098_v49  ;;  %v1418_v46 = vpop.f32.mrf.mxu1  ;;  %1879 = vmatpush1.bf16.msra.mxu0 %v4380_v47  ;;  %1932 = vmatpush1.bf16.msra.mxu1 %v4389_v38  ;;  %v1595_v58 = vadd.f32 %v4334_v30, %v1415_v55  ;;  %v1594_v17 = vadd.f32 %v4334_v30, %v1364_v15  ;;  %v1644_v61 = vmax.f32 %v1580_v1, 0.0  ;;  %v5104_v55 = vld [vmem:[#allocation13_spill] sm:$0xff] }
 0x15c   : > { %v1419_v29 = vadd.f32 %v1418_v46, %v5099_v12  ;;  %v1367_v35 = vpop.f32.mrf.mxu0  ;;  %v1596_v38 = vadd.f32 %v4334_v30, %v1417_v20  ;;  %v1657_v44 = vmax.f32 %v1593_v56, 0.0  ;;  %v1564_v6 = vadd.f32 %v4323_v33, %v1407_v11  ;;  %v5105_v20 = vld [vmem:[#allocation14_spill] sm:$0xff] }
 0x15d   : > { %v1609_v51 = vadd.f32 %v4351_v28, %v1366_v32  ;;  %v1368_v13 = vadd.f32 %v1367_v35, %v5100_v39  ;;  %v1420_v47 = vpop.f32.mrf.mxu1  ;;  %v1659_v16 = vmax.f32 %v1595_v58, 0.0  ;;  %v1658_v18 = vmax.f32 %v1594_v17, 0.0 }
 0x15e   : > { %v1611_v2 = vadd.f32 %v4351_v28, %v1419_v29  ;;  %v1421_v42 = vadd.f32 %v1420_v47, %v5101_v43  ;;  %3716 = vmatmul.mubr.msk.bf16.vlgmr.msra.gmra.mxu0 %vm1751_vm3, %v4387_v5  ;;  %3718 = vmatmul.mubr.msk.bf16.vlgmr.msra.gmra.mxu1 %vm1751_vm3, %v4387_v5  ;;  %v1457_v59 = vpop.f32.mrf.mxu0  ;;  %v1642_v19 = vmax.f32 %v1578_v24, 0.0  ;;  %v1660_v31 = vmax.f32 %v1596_v38, 0.0  ;;  %v5106_v29 = vld [vmem:[#allocation17_spill] sm:$0xff]  ;;  %v5108_v43 = vld [vmem:[#allocation19_spill] sm:$0xff] }
 0x15f   : > { %v1673_v14 = vmax.f32 %v1609_v51, 0.0  ;;  %v1610_v63 = vadd.f32 %v4351_v28, %v1368_v13  ;;  %v1458_v53 = vadd.f32 %v1457_v59, %v5102_v41  ;;  %v1510_v0 = vpop.f32.mrf.mxu1  ;;  %1906 = vmatprep.mubr.bf16.mxu0 %v5095_v37  ;;  %1959 = vmatprep.mubr.bf16.mxu1 %v5095_v37  ;;  %v1626_v10 = vmax.f32 %v1562_v21, 0.0  ;;  %v5107_v13 = vld [vmem:[#allocation18_spill] sm:$0xff]  ;;  %v5110_v41 = vld [vmem:[#allocation20_spill] sm:$0xff] }
 0x160   : > { %v1675_v3 = vmax.f32 %v1611_v2, 0.0  ;;  %v1612_v60 = vadd.f32 %v4351_v28, %v1421_v42  ;;  %v1511_v7 = vadd.f32 %v1510_v0, %v5103_v4  ;;  %v1459_v54 = vpop.f32.mrf.mxu0  ;;  %v1628_v56 = vmax.f32 %v1564_v6, 0.0  ;;  %v5112_v4 = vld [vmem:[#allocation21_spill] sm:$0xff] }
 0x161   : > { %v1709_v48 = vpack.c.bf16 %v1673_v14, %v1657_v44  ;;  %v1674_v27 = vmax.f32 %v1610_v63, 0.0  ;;  %v1512_v8 = vpop.f32.mrf.mxu1  ;;  %v1565_v9 = vadd.f32 %v4323_v33, %v1458_v53  ;;  %v1694_v24 = vpack.c.bf16 %v1642_v19, %v1626_v10  ;;  %v5109_v14 = vld [vmem:[#allocation15_spill] sm:$0xff]  ;;  %v5114_v19 = vld [vmem:[#allocation22_spill] sm:$0xff]  ;;  %v5117_v10 = vld [vmem:[#allocation24_spill] sm:$0xff] }
 0x162   : > { %v1711_v26 = vpack.c.bf16 %v1675_v3, %v1659_v16  ;;  %v1676_v40 = vmax.f32 %v1612_v60, 0.0  ;;  %v1461_v57 = vpop.f32.mrf.mxu0  ;;  %v1567_v62 = vadd.f32 %v4323_v33, %v1511_v7  ;;  %v1696_v17 = vpack.c.bf16 %v1644_v61, %v1628_v56  ;;  %v5111_v16 = vld [vmem:[#allocation16_spill] sm:$0xff] }
 0x163   : > { %v1462_v25 = vadd.f32 %v1461_v57, %v5104_v55  ;;  %v1514_v36 = vpop.f32.mrf.mxu1  ;;  %v1710_v15 = vpack.c.bf16 %v1674_v27, %v1658_v18  ;;  %v1629_v58 = vmax.f32 %v1565_v9, 0.0  ;;  %v5113_v18 = vld [vmem:[#allocation11_spill] sm:$0xff] }
 0x164   : > { %v1515_v52 = vadd.f32 %v1514_v36, %v5105_v20  ;;  %v1463_v23 = vpop.f32.mrf.mxu0  ;;  %v1712_v11 = vpack.c.bf16 %v1676_v40, %v1660_v31  ;;  %v1631_v51 = vmax.f32 %v1567_v62, 0.0  ;;  %v5115_v40 = vld [vmem:[#allocation12_spill] sm:$0xff]  ;;  %v5116_v55 = vld [vmem:[#allocation23_spill] sm:$0xff] }
 0x165   : > { %v1581_v49 = vadd.f32 %v4329_v34, %v1462_v25  ;;  %v1516_v32 = vpop.f32.mrf.mxu1  ;;  %1982 = vmatprep.subr.bf16.mxu0 %v1710_v15  ;;  %v1464_v63 = vadd.f32 %v1463_v23, %v5109_v14  ;;  %v1513_v57 = vadd.f32 %v1512_v8, %v5115_v40 }
 0x166   : > { %v1583_v46 = vadd.f32 %v4329_v34, %v1515_v52  ;;  %3717 = vmatmul.mubr.msk.bf16.gmra.mxu0 %vm1751_vm3, %v4423_v50  ;;  %3719 = vmatmul.mubr.msk.bf16.gmra.mxu1 %vm1751_vm3, %v4423_v50  ;;  %v1467_v21 = vpop.f32.mrf.mxu0  ;;  %v1517_v3 = vadd.f32 %v1516_v32, %v5111_v16 }
 0x167   : > { %v1645_v12 = vmax.f32 %v1581_v49, 0.0  ;;  %2035 = vmatprep.subr.bf16.mxu1 %v1712_v11  ;;  %v1468_v35 = vadd.f32 %v1467_v21, %v5106_v29  ;;  %v1520_v1 = vpop.f32.mrf.mxu1  ;;  %1983 = vmatpush1.bf16.msra.mxu0 %v1709_v48  ;;  %v1460_v48 = vadd.f32 %v1459_v54, %v5113_v18  ;;  %v1568_v49 = vadd.f32 %v4323_v33, %v1513_v57 }
 0x168   : > { %v1647_v39 = vmax.f32 %v1583_v46, 0.0  ;;  %v1521_v47 = vadd.f32 %v1520_v1, %v5107_v13  ;;  %2036 = vmatpush1.bf16.msra.mxu1 %v1711_v26  ;;  %1984 = vmatprep.subr.bf16.mxu0 %v1694_v24  ;;  %v1469_v38 = vpop.f32.mrf.mxu0 }
 0x169   : > { %v4488_v2 = vpack.c.bf16 %v1645_v12, %v1629_v58  ;;  %2037 = vmatprep.subr.bf16.mxu1 %v1696_v17  ;;  %v1470_v42 = vadd.f32 %v1469_v38, %v5108_v43  ;;  %v1522_v59 = vpop.f32.mrf.mxu1  ;;  %2002 = vmatprep.mubr.bf16.mxu0 %v5095_v37  ;;  %v1597_v60 = vadd.f32 %v4334_v30, %v1468_v35 }
 0x16a   : > { %v1699_v44 = vpack.c.bf16 %v1647_v39, %v1631_v51  ;;  %v1523_v53 = vadd.f32 %v1522_v59, %v5110_v41  ;;  %v1471_v0 = vpop.f32.mrf.mxu0  ;;  %2055 = vmatprep.mubr.bf16.mxu1 %v5095_v37  ;;  %v1599_v27 = vadd.f32 %v4334_v30, %v1521_v47  ;;  %v1632_v51 = vmax.f32 %v1568_v49, 0.0 }
 0x16b   : > { %v1472_v7 = vadd.f32 %v1471_v0, %v5112_v4  ;;  %v1524_v6 = vpop.f32.mrf.mxu1  ;;  %1985 = vmatpush1.bf16.msra.mxu0 %v4440_v45  ;;  %v1598_v61 = vadd.f32 %v4334_v30, %v1470_v42  ;;  %v1582_v45 = vadd.f32 %v4329_v34, %v1464_v63  ;;  %v1661_v8 = vmax.f32 %v1597_v60, 0.0  ;;  %v4543_v42 = vpop.permute.xlu1 %1738 }
 0x16c   : > { %v1525_v31 = vadd.f32 %v1524_v6, %v5114_v19  ;;  %2038 = vmatpush1.bf16.msra.mxu1 %v4446_v22  ;;  %v1473_v26 = vpop.f32.mrf.mxu0  ;;  %v1600_v54 = vadd.f32 %v4334_v30, %v1523_v53  ;;  %v1584_v22 = vadd.f32 %v4329_v34, %v1517_v3  ;;  %v1566_v30 = vadd.f32 %v4323_v33, %v1460_v48 }
 0x16d   : > { %v1613_v9 = vadd.f32 %v4351_v28, %v1472_v7  ;;  %v1474_v25 = vadd.f32 %v1473_v26, %v5116_v55  ;;  %v1526_v36 = vpop.f32.mrf.mxu1  ;;  %v1663_v23 = vmax.f32 %v1599_v27, 0.0  ;;  %v1662_v34 = vmax.f32 %v1598_v61, 0.0 }
 0x16e   : > { %v1615_v15 = vadd.f32 %v4351_v28, %v1525_v31  ;;  %v1527_v62 = vadd.f32 %v1526_v36, %v5117_v10  ;;  %3720 = vmatmul.mubr.msk.bf16.vlgmr.msra.gmra.mxu0 %vm1751_vm3, %v4387_v5  ;;  %v1646_v21 = vmax.f32 %v1582_v45, 0.0  ;;  %v1664_v24 = vmax.f32 %v1600_v54, 0.0 }
 0x16f   : > { %v1677_v20 = vmax.f32 %v1613_v9, 0.0  ;;  %v1614_v52 = vadd.f32 %v4351_v28, %v1474_v25  ;;  %3722 = vmatmul.mubr.msk.bf16.vlgmr.msra.gmra.mxu1 %vm1751_vm3, %v4387_v5  ;;  %2012 = vmatprep.mubr.bf16.mxu0 %v5095_v37  ;;  %v1648_v29 = vmax.f32 %v1584_v22, 0.0  ;;  %v1630_v1 = vmax.f32 %v1566_v30, 0.0  ;;  %v4547_v0 = vpop.permute.xlu1 %1728 }
 0x170   : > { %v1679_v11 = vmax.f32 %v1615_v15, 0.0  ;;  %v1616_v56 = vadd.f32 %v4351_v28, %v1527_v62  ;;  %2065 = vmatprep.mubr.bf16.mxu1 %v5095_v37 }
 0x171   : > { %v1713_v32 = vpack.c.bf16 %v1677_v20, %v1661_v8  ;;  %v1678_v46 = vmax.f32 %v1614_v52, 0.0  ;;  %v1698_v28 = vpack.c.bf16 %v1646_v21, %v1630_v1  ;;  %v1700_v33 = vpack.c.bf16 %v1648_v29, %v1632_v51 }
 0x172   : > { %v1715_v58 = vpack.c.bf16 %v1679_v11, %v1663_v23  ;;  %v1680_v12 = vmax.f32 %v1616_v56, 0.0 }
 0x173   : > { %v1714_v35 = vpack.c.bf16 %v1678_v46, %v1662_v34 }
 0x174   : > { %v1716_v17 = vpack.c.bf16 %v1680_v12, %v1664_v24 }
 0x175   : > { %2088 = vmatprep.subr.bf16.mxu0 %v1714_v35 }
 0x176   : > { %3721 = vmatmul.mubr.msk.bf16.gmra.mxu0 %vm1751_vm3, %v4423_v50  ;;  %2141 = vmatprep.subr.bf16.mxu1 %v1716_v17 }
 0x177   : > { %3723 = vmatmul.mubr.msk.bf16.gmra.mxu1 %vm1751_vm3, %v4423_v50  ;;  %2089 = vmatpush1.bf16.msra.mxu0 %v1713_v32 }
 0x178   : > { %2142 = vmatpush1.bf16.msra.mxu1 %v1715_v58  ;;  %2090 = vmatprep.subr.bf16.mxu0 %v1698_v28 }
 0x179   : > { %2143 = vmatprep.subr.bf16.mxu1 %v1700_v33  ;;  %2108 = vmatprep.mubr.bf16.mxu0 %v5095_v37 }
 0x17a   : > { %2161 = vmatprep.mubr.bf16.mxu1 %v5095_v37 }
 0x17b   : > { %2091 = vmatpush1.bf16.msra.mxu0 %v4488_v2 }
 0x17c   : > { %2144 = vmatpush1.bf16.msra.mxu1 %v1699_v44 }
 0x17e   : > { %3724 = vmatmul.mubr.msk.bf16.vlgmr.msra.gmra.mxu0 %vm1751_vm3, %v4387_v5 }
 0x17f   : > { %3726 = vmatmul.mubr.msk.bf16.vlgmr.msra.gmra.mxu1 %vm1751_vm3, %v4387_v5  ;;  %2118 = vmatprep.mubr.bf16.mxu0 %v5095_v37  ;;  %v4541_v5 = vpop.permute.xlu0 %1733 }
 0x180   : > { %2171 = vmatprep.mubr.bf16.mxu1 %v5095_v37 }
 0x186   : > { %3725 = vmatmul.mubr.msk.bf16.gmra.mxu0 %vm1751_vm3, %v4423_v50 }
 0x187   : > { %3727 = vmatmul.mubr.msk.bf16.gmra.mxu1 %vm1751_vm3, %v4423_v50  ;;  %2356 = vmatprep.mubr.bf16.mxu0 %v5095_v37  ;;  %v4545_v50 = vpop.permute.xlu0 %1723 }
 0x188   : > { %2409 = vmatprep.mubr.bf16.mxu1 %v5095_v37 }
 0x20d   : > { %v1792_v39 = vpop.f32.mrf.mxu0 }
 0x20e   : > { %v1845_v13 = vpop.f32.mrf.mxu1  ;;  %v1793_v3 = vadd.f32 %v1792_v39, %v4545_v50 }
 0x20f   : > { %v1794_v47 = vpop.f32.mrf.mxu0  ;;  %v1846_v11 = vadd.f32 %v1845_v13, %v4545_v50 }
 0x210   : > { %v1847_v38 = vpop.f32.mrf.mxu1  ;;  %v1795_v26 = vadd.f32 %v1794_v47, %v4545_v50  ;;  %v2182_v28 = vmax.f32 %v1793_v3, 0.0 }
 0x211   : > { %v1796_v2 = vpop.f32.mrf.mxu0  ;;  %v1848_v40 = vadd.f32 %v1847_v38, %v4545_v50  ;;  %v2184_v39 = vmax.f32 %v1846_v11, 0.0 }
 0x212   : > { %v1849_v43 = vpop.f32.mrf.mxu1  ;;  %v1797_v55 = vadd.f32 %v1796_v2, %v4547_v0  ;;  %v2183_v56 = vmax.f32 %v1795_v26, 0.0 }
 0x213   : > { %v1798_v59 = vpop.f32.mrf.mxu0  ;;  %v1850_v25 = vadd.f32 %v1849_v43, %v4547_v0  ;;  %v2185_v21 = vmax.f32 %v1848_v40, 0.0 }
 0x214   : > { %v1851_v44 = vpop.f32.mrf.mxu1  ;;  %v1799_v60 = vadd.f32 %v1798_v59, %v4547_v0  ;;  %v2198_v24 = vmax.f32 %v1797_v55, 0.0 }
 0x215   : > { %v1802_v14 = vpop.f32.mrf.mxu0  ;;  %v1852_v18 = vadd.f32 %v1851_v44, %v4547_v0  ;;  %v2200_v29 = vmax.f32 %v1850_v25, 0.0  ;;  %v4572_v44 = vld [vmem:[%s5064_s5 + $0x10] sm:$0xff]  }
 0x216   : > { %v1855_v63 = vpop.f32.mrf.mxu1  ;;  %v1803_v48 = vadd.f32 %v1802_v14, %v4541_v5  ;;  %v2199_v54 = vmax.f32 %v1799_v60, 0.0  ;;  %v2251_v38 = vpack.c.bf16 %v2198_v24, %v2182_v28 }
 0x217   : > { %v1804_v41 = vpop.f32.mrf.mxu0  ;;  %v1856_v57 = vadd.f32 %v1855_v63, %v4541_v5  ;;  %v2201_v20 = vmax.f32 %v1852_v18, 0.0  ;;  %v2253_v2 = vpack.c.bf16 %v2200_v29, %v2184_v39 }
 0x218   : > { %v1857_v53 = vpop.f32.mrf.mxu1  ;;  %v1805_v4 = vadd.f32 %v1804_v41, %v4541_v5  ;;  %v2214_v52 = vmax.f32 %v1803_v48, 0.0  ;;  %v2252_v35 = vpack.c.bf16 %v2199_v54, %v2183_v56  ;;  %v4597_v54 = vld [vmem:[%s5064_s5 + $0x18] sm:$0xff]  }
 0x219   : > { %v1806_v16 = vpop.f32.mrf.mxu0  ;;  %v1858_v27 = vadd.f32 %v1857_v53, %v4541_v5  ;;  %v2216_v49 = vmax.f32 %v1856_v57, 0.0  ;;  %v2254_v33 = vpack.c.bf16 %v2201_v20, %v2185_v21 }
 0x21a   : > { %v1807_v7 = vadd.f32 %v1806_v16, %v4543_v42  ;;  %v1859_v6 = vpop.f32.mrf.mxu1  ;;  %v2215_v15 = vmax.f32 %v1805_v4, 0.0 }
 0x21b   : > { %v1860_v19 = vadd.f32 %v1859_v6, %v4543_v42  ;;  %v1808_v31 = vpop.f32.mrf.mxu0  ;;  %v2217_v30 = vmax.f32 %v1858_v27, 0.0 }
 0x21c   : > { %v1809_v61 = vadd.f32 %v1808_v31, %v4543_v42  ;;  %v1861_v9 = vpop.f32.mrf.mxu1  ;;  %v2230_v36 = vmax.f32 %v1807_v7, 0.0 }
 0x21d   : > { %v1862_v45 = vadd.f32 %v1861_v9, %v4543_v42  ;;  %v2232_v10 = vmax.f32 %v1860_v19, 0.0 }
 0x21e   : > { %v2231_v62 = vmax.f32 %v1809_v61, 0.0  ;;  %v4564_v22 = vpop.f32.mrf.mxu0  ;;  %v4566_v8 = vpop.f32.mrf.mxu1  ;;  %v2267_v58 = vpack.c.bf16 %v2230_v36, %v2214_v52 }
 0x21f   : > { %v2233_v23 = vmax.f32 %v1862_v45, 0.0  ;;  %v2269_v1 = vpack.c.bf16 %v2232_v10, %v2216_v49 }
 0x220   : > { %v2268_v34 = vpack.c.bf16 %v2231_v62, %v2215_v15  ;;  %v1900_v32 = vpop.f32.mrf.mxu0  ;;  %v1953_v46 = vpop.f32.mrf.mxu1 }
 0x221   : > { %v2270_v12 = vpack.c.bf16 %v2233_v23, %v2217_v30  ;;  %v1901_v6 = vadd.f32 %v1900_v32, %v4545_v50  ;;  %v1954_v18 = vadd.f32 %v1953_v46, %v4545_v50  ;;  %v1899_v30 = vadd.f32 %v4564_v22, %v4545_v50 }
 0x222   : > { %v1902_v17 = vpop.f32.mrf.mxu0  ;;  %v1955_v51 = vpop.f32.mrf.mxu1  ;;  %2336 = vmatprep.subr.bf16.mxu0 %v2268_v34  ;;  %v1952_v23 = vadd.f32 %v4566_v8, %v4545_v50 }
 0x223   : > { %2389 = vmatprep.subr.bf16.mxu1 %v2270_v12  ;;  %2337 = vmatpush1.bf16.msra.mxu0 %v2267_v58  ;;  %v1903_v26 = vadd.f32 %v1902_v17, %v4547_v0  ;;  %v1956_v9 = vadd.f32 %v1955_v51, %v4547_v0  ;;  %v2187_v34 = vmax.f32 %v1901_v6, 0.0  ;;  %v2189_v58 = vmax.f32 %v1954_v18, 0.0 }
 0x224   : > { %v1904_v13 = vpop.f32.mrf.mxu0  ;;  %v1957_v47 = vpop.f32.mrf.mxu1  ;;  %2390 = vmatpush1.bf16.msra.mxu1 %v2269_v1  ;;  %2338 = vmatprep.subr.bf16.mxu0 %v2252_v35  ;;  %v2186_v8 = vmax.f32 %v1899_v30, 0.0  ;;  %v2188_v39 = vmax.f32 %v1952_v23, 0.0 }
 0x225   : > { %2391 = vmatprep.subr.bf16.mxu1 %v2254_v33  ;;  %v1905_v41 = vadd.f32 %v1904_v13, %v4547_v0  ;;  %v1958_v48 = vadd.f32 %v1957_v47, %v4547_v0  ;;  %v2202_v12 = vmax.f32 %v1903_v26, 0.0  ;;  %v2204_v1 = vmax.f32 %v1956_v9, 0.0 }
 0x226   : > { %v1908_v43 = vpop.f32.mrf.mxu0  ;;  %v1961_v59 = vpop.f32.mrf.mxu1 }
 0x227   : > { %2339 = vmatpush1.bf16.msra.mxu0 %v2251_v38  ;;  %v1909_v27 = vadd.f32 %v1908_v43, %v4541_v5  ;;  %v1962_v40 = vadd.f32 %v1961_v59, %v4541_v5  ;;  %v2203_v55 = vmax.f32 %v1905_v41, 0.0  ;;  %v2205_v11 = vmax.f32 %v1958_v48, 0.0 }
 0x228   : > { %v1910_v14 = vpop.f32.mrf.mxu0  ;;  %v1963_v63 = vpop.f32.mrf.mxu1  ;;  %2392 = vmatpush1.bf16.msra.mxu1 %v2253_v2  ;;  %v2255_v47 = vpack.c.bf16 %v2202_v12, %v2186_v8  ;;  %v2257_v2 = vpack.c.bf16 %v2204_v1, %v2188_v39 }
 0x229   : > { %v1911_v53 = vadd.f32 %v1910_v14, %v4541_v5  ;;  %v1964_v60 = vadd.f32 %v1963_v63, %v4541_v5  ;;  %v2218_v56 = vmax.f32 %v1909_v27, 0.0  ;;  %v2220_v32 = vmax.f32 %v1962_v40, 0.0 }
 0x22a   : > { %v1912_v16 = vpop.f32.mrf.mxu0  ;;  %v1965_v3 = vpop.f32.mrf.mxu1  ;;  %3738 = vmatmul.mubr.msk.bf16.vlgmr.msra.gmra.mxu0 %vm1751_vm3, %v4572_v44  ;;  %v2256_v22 = vpack.c.bf16 %v2203_v55, %v2187_v34  ;;  %v2258_v28 = vpack.c.bf16 %v2205_v11, %v2189_v58 }
 0x22b   : > { %v1913_v4 = vadd.f32 %v1912_v16, %v4543_v42  ;;  %v1966_v7 = vadd.f32 %v1965_v3, %v4543_v42  ;;  %3740 = vmatmul.mubr.msk.bf16.vlgmr.msra.gmra.mxu1 %vm1751_vm3, %v4572_v44  ;;  %2366 = vmatprep.mubr.bf16.mxu0 %v5095_v37  ;;  %v2219_v25 = vmax.f32 %v1911_v53, 0.0  ;;  %v2221_v15 = vmax.f32 %v1964_v60, 0.0 }
 0x22c   : > { %v1914_v19 = vpop.f32.mrf.mxu0  ;;  %v1967_v31 = vpop.f32.mrf.mxu1  ;;  %2419 = vmatprep.mubr.bf16.mxu1 %v5095_v37 }
 0x22d   : > { %v1915_v57 = vadd.f32 %v1914_v19, %v4543_v42  ;;  %v1968_v61 = vadd.f32 %v1967_v31, %v4543_v42  ;;  %v2234_v36 = vmax.f32 %v1913_v4, 0.0  ;;  %v2236_v10 = vmax.f32 %v1966_v7, 0.0 }
 0x22e   : > { %v2004_v45 = vpop.f32.mrf.mxu0 }
 0x22f   : > { %v2235_v62 = vmax.f32 %v1915_v57, 0.0  ;;  %v2237_v20 = vmax.f32 %v1968_v61, 0.0  ;;  %v4599_v52 = vpop.f32.mrf.mxu1  ;;  %v2271_v29 = vpack.c.bf16 %v2234_v36, %v2218_v56  ;;  %v2273_v17 = vpack.c.bf16 %v2236_v10, %v2220_v32 }
 0x230   : > { %v2006_v49 = vpop.f32.mrf.mxu0  ;;  %v4612_v41 = vadd.f32 %v2004_v45, %v4545_v50  ;;  %v2058_v56 = vadd.f32 %v4599_v52, %v4545_v50 }
 0x231   : > { %v2272_v46 = vpack.c.bf16 %v2235_v62, %v2219_v25  ;;  %v2274_v21 = vpack.c.bf16 %v2237_v20, %v2221_v15  ;;  %v2059_v24 = vpop.f32.mrf.mxu1  ;;  %v2007_v48 = vadd.f32 %v2006_v49, %v4545_v50 }
 0x232   : > { %v2008_v35 = vpop.f32.mrf.mxu0  ;;  %3739 = vmatmul.mubr.msk.bf16.gmra.mxu0 %vm1751_vm3, %v4597_v54  ;;  %v2060_v40 = vadd.f32 %v2059_v24, %v4545_v50 }
 0x233   : > { %v2061_v51 = vpop.f32.mrf.mxu1  ;;  %3741 = vmatmul.mubr.msk.bf16.gmra.mxu1 %vm1751_vm3, %v4597_v54  ;;  %2442 = vmatprep.subr.bf16.mxu0 %v2272_v46  ;;  %v2009_v57 = vadd.f32 %v2008_v35, %v4547_v0 }
 0x234   : > { %2495 = vmatprep.subr.bf16.mxu1 %v2274_v21  ;;  %v2010_v33 = vpop.f32.mrf.mxu0  ;;  %2443 = vmatpush1.bf16.msra.mxu0 %v2271_v29  ;;  %v2062_v61 = vadd.f32 %v2061_v51, %v4547_v0  ;;  %v2191_v21 = vmax.f32 %v2007_v48, 0.0  ;;  %v2193_v24 = vmax.f32 %v2060_v40, 0.0 }
 0x235   : > { %v2063_v13 = vpop.f32.mrf.mxu1  ;;  %2496 = vmatpush1.bf16.msra.mxu1 %v2273_v17  ;;  %2444 = vmatprep.subr.bf16.mxu0 %v2256_v22  ;;  %v2011_v53 = vadd.f32 %v2010_v33, %v4547_v0  ;;  %v2206_v29 = vmax.f32 %v2009_v57, 0.0  ;;  %v2192_v33 = vmax.f32 %v2058_v56, 0.0 }
 0x236   : > { %2497 = vmatprep.subr.bf16.mxu1 %v2258_v28  ;;  %v2014_v38 = vpop.f32.mrf.mxu0  ;;  %2462 = vmatprep.mubr.bf16.mxu0 %v5095_v37  ;;  %v2064_v4 = vadd.f32 %v2063_v13, %v4547_v0  ;;  %v2208_v35 = vmax.f32 %v2062_v61, 0.0  ;;  %v2190_v28 = vmax.f32 %v4612_v41, 0.0 }
 0x237   : > { %v2067_v43 = vpop.f32.mrf.mxu1  ;;  %2515 = vmatprep.mubr.bf16.mxu1 %v5095_v37  ;;  %v2015_v27 = vadd.f32 %v2014_v38, %v4541_v5  ;;  %v2207_v62 = vmax.f32 %v2011_v53, 0.0 }
 0x238   : > { %v2016_v59 = vpop.f32.mrf.mxu0  ;;  %2445 = vmatpush1.bf16.msra.mxu0 %v2255_v47  ;;  %v2068_v19 = vadd.f32 %v2067_v43, %v4541_v5  ;;  %v2209_v20 = vmax.f32 %v2064_v4, 0.0  ;;  %v2259_v47 = vpack.c.bf16 %v2206_v29, %v2190_v28  ;;  %v2261_v38 = vpack.c.bf16 %v2208_v35, %v2192_v33 }
 0x239   : > { %v2069_v14 = vpop.f32.mrf.mxu1  ;;  %2498 = vmatpush1.bf16.msra.mxu1 %v2257_v2  ;;  %v2017_v16 = vadd.f32 %v2016_v59, %v4541_v5  ;;  %v2222_v49 = vmax.f32 %v2015_v27, 0.0  ;;  %v2260_v51 = vpack.c.bf16 %v2207_v62, %v2191_v21 }
 0x23a   : > { %v2018_v63 = vpop.f32.mrf.mxu0  ;;  %v2070_v7 = vadd.f32 %v2069_v14, %v4541_v5  ;;  %v2224_v34 = vmax.f32 %v2068_v19, 0.0  ;;  %v2262_v8 = vpack.c.bf16 %v2209_v20, %v2193_v24 }
 0x23b   : > { %v2019_v3 = vadd.f32 %v2018_v63, %v4543_v42  ;;  %v2071_v60 = vpop.f32.mrf.mxu1  ;;  %3742 = vmatmul.mubr.msk.bf16.vlgmr.msra.gmra.mxu0 %vm1751_vm3, %v4572_v44  ;;  %v2223_v25 = vmax.f32 %v2017_v16, 0.0 }
 0x23c   : > { %v2072_v6 = vadd.f32 %v2071_v60, %v4543_v42  ;;  %3744 = vmatmul.mubr.msk.bf16.vlgmr.msra.gmra.mxu1 %vm1751_vm3, %v4572_v44  ;;  %v2020_v18 = vpop.f32.mrf.mxu0  ;;  %2472 = vmatprep.mubr.bf16.mxu0 %v5095_v37  ;;  %v2225_v30 = vmax.f32 %v2070_v7, 0.0 }
 0x23d   : > { %v2021_v31 = vadd.f32 %v2020_v18, %v4543_v42  ;;  %v2073_v26 = vpop.f32.mrf.mxu1  ;;  %2525 = vmatprep.mubr.bf16.mxu1 %v5095_v37  ;;  %v2238_v36 = vmax.f32 %v2019_v3, 0.0 }
 0x23e   : > { %v2074_v9 = vadd.f32 %v2073_v26, %v4543_v42  ;;  %v4634_v55 = vpop.f32.mrf.mxu0  ;;  %v2240_v45 = vmax.f32 %v2072_v6, 0.0 }
 0x23f   : > { %v2239_v15 = vmax.f32 %v2021_v31, 0.0  ;;  %v4636_v10 = vpop.f32.mrf.mxu1  ;;  %v2275_v1 = vpack.c.bf16 %v2238_v36, %v2222_v49  ;;  %v2111_v20 = vadd.f32 %v4634_v55, %v4545_v50 }
 0x240   : > { %v2241_v23 = vmax.f32 %v2074_v9, 0.0  ;;  %v2112_v11 = vpop.f32.mrf.mxu0  ;;  %v2277_v22 = vpack.c.bf16 %v2240_v45, %v2224_v34 }
 0x241   : > { %v2276_v32 = vpack.c.bf16 %v2239_v15, %v2223_v25  ;;  %v2165_v46 = vpop.f32.mrf.mxu1  ;;  %v2113_v63 = vadd.f32 %v2112_v11, %v4545_v50  ;;  %v2194_v55 = vmax.f32 %v2111_v20, 0.0 }
 0x242   : > { %v2278_v58 = vpack.c.bf16 %v2241_v23, %v2225_v30  ;;  %v2114_v12 = vpop.f32.mrf.mxu0  ;;  %v2166_v19 = vadd.f32 %v2165_v46, %v4545_v50 }
 0x243   : > { %v2167_v17 = vpop.f32.mrf.mxu1  ;;  %3743 = vmatmul.mubr.msk.bf16.gmra.mxu0 %vm1751_vm3, %v4597_v54  ;;  %2548 = vmatprep.subr.bf16.mxu0 %v2276_v32  ;;  %v2115_v31 = vadd.f32 %v2114_v12, %v4547_v0  ;;  %v2195_v56 = vmax.f32 %v2113_v63, 0.0 }
 0x244   : > { %3745 = vmatmul.mubr.msk.bf16.gmra.mxu1 %vm1751_vm3, %v4597_v54  ;;  %2601 = vmatprep.subr.bf16.mxu1 %v2278_v58  ;;  %v2116_v52 = vpop.f32.mrf.mxu0  ;;  %v2168_v57 = vadd.f32 %v2167_v17, %v4547_v0 }
 0x245   : > { %v2169_v39 = vpop.f32.mrf.mxu1  ;;  %2549 = vmatpush1.bf16.msra.mxu0 %v2275_v1  ;;  %2602 = vmatpush1.bf16.msra.mxu1 %v2277_v22  ;;  %v2117_v3 = vadd.f32 %v2116_v52, %v4547_v0  ;;  %v2210_v34 = vmax.f32 %v2115_v31, 0.0 }
 0x246   : > { %2550 = vmatprep.subr.bf16.mxu0 %v2260_v51  ;;  %2603 = vmatprep.subr.bf16.mxu1 %v2262_v8  ;;  %v2120_v13 = vpop.f32.mrf.mxu0  ;;  %v2170_v6 = vadd.f32 %v2169_v39, %v4547_v0  ;;  %v2197_v0 = vmax.f32 %v2166_v19, 0.0  ;;  %v2212_v46 = vmax.f32 %v2168_v57, 0.0  ;;  %v4691_v8 = vpop.permute.xlu1 %2305 }
 0x247   : > { %v2173_v2 = vpop.f32.mrf.mxu1  ;;  %2568 = vmatprep.mubr.bf16.mxu0 %v5095_v37  ;;  %2621 = vmatprep.mubr.bf16.mxu1 %v5095_v37  ;;  %v2121_v18 = vadd.f32 %v2120_v13, %v4541_v5  ;;  %v2211_v36 = vmax.f32 %v2117_v3, 0.0 }
 0x248   : > { %v2122_v43 = vpop.f32.mrf.mxu0  ;;  %v2174_v26 = vadd.f32 %v2173_v2, %v4541_v5  ;;  %v2213_v30 = vmax.f32 %v2170_v6, 0.0 }
 0x249   : > { %v2175_v59 = vpop.f32.mrf.mxu1  ;;  %2551 = vmatpush1.bf16.msra.mxu0 %v2259_v47  ;;  %2604 = vmatpush1.bf16.msra.mxu1 %v2261_v38  ;;  %v2123_v41 = vadd.f32 %v2122_v43, %v4541_v5  ;;  %v2226_v23 = vmax.f32 %v2121_v18, 0.0  ;;  %v2264_v21 = vpack.c.bf16 %v2211_v36, %v2195_v56 }
 0x24a   : > { %v2124_v14 = vpop.f32.mrf.mxu0  ;;  %v2176_v60 = vadd.f32 %v2175_v59, %v4541_v5  ;;  %v2164_v5 = vadd.f32 %v4636_v10, %v4545_v50  ;;  %v2266_v58 = vpack.c.bf16 %v2213_v30, %v2197_v0  ;;  %v2263_v10 = vpack.c.bf16 %v2210_v34, %v2194_v55  ;;  %v4695_v38 = vpop.permute.xlu1 %2295 }
 0x24b   : > { %v2125_v53 = vadd.f32 %v2124_v14, %v4543_v42  ;;  %v2177_v16 = vpop.f32.mrf.mxu1  ;;  %v2227_v61 = vmax.f32 %v2123_v41, 0.0 }
 0x24c   : > { %v2178_v4 = vadd.f32 %v2177_v16, %v4543_v42  ;;  %3746 = vmatmul.mubr.msk.bf16.vlgmr.msra.gmra.mxu0 %vm1751_vm3, %v4572_v44  ;;  %3748 = vmatmul.mubr.msk.bf16.vlgmr.msra.gmra.mxu1 %vm1751_vm3, %v4572_v44  ;;  %v2126_v7 = vpop.f32.mrf.mxu0  ;;  %v2229_v45 = vmax.f32 %v2176_v60, 0.0  ;;  %v2196_v50 = vmax.f32 %v2164_v5, 0.0 }
 0x24d   : > { %v2127_v48 = vadd.f32 %v2126_v7, %v4543_v42  ;;  %v2179_v27 = vpop.f32.mrf.mxu1  ;;  %2578 = vmatprep.mubr.bf16.mxu0 %v5095_v37  ;;  %2631 = vmatprep.mubr.bf16.mxu1 %v5095_v37  ;;  %v2242_v9 = vmax.f32 %v2125_v53, 0.0 }
 0x24e   : > { %v2180_v40 = vadd.f32 %v2179_v27, %v4543_v42  ;;  %v2244_v15 = vmax.f32 %v2178_v4, 0.0  ;;  %v2228_v42 = vmax.f32 %v2174_v26, 0.0  ;;  %v2265_v12 = vpack.c.bf16 %v2212_v46, %v2196_v50 }
 0x24f   : > { %v2243_v25 = vmax.f32 %v2127_v48, 0.0  ;;  %v2279_v32 = vpack.c.bf16 %v2242_v9, %v2226_v23 }
 0x250   : > { %v2245_v62 = vmax.f32 %v2180_v40, 0.0  ;;  %v2281_v24 = vpack.c.bf16 %v2244_v15, %v2228_v42 }
 0x251   : > { %v2280_v11 = vpack.c.bf16 %v2243_v25, %v2227_v61 }
 0x252   : > { %v2282_v49 = vpack.c.bf16 %v2245_v62, %v2229_v45 }
 0x253   : > { %2654 = vmatprep.subr.bf16.mxu0 %v2280_v11 }
 0x254   : > { %3747 = vmatmul.mubr.msk.bf16.gmra.mxu0 %vm1751_vm3, %v4597_v54  ;;  %3749 = vmatmul.mubr.msk.bf16.gmra.mxu1 %vm1751_vm3, %v4597_v54 }
 0x255   : > { %2707 = vmatprep.subr.bf16.mxu1 %v2282_v49  ;;  %2655 = vmatpush1.bf16.msra.mxu0 %v2279_v32 }
 0x256   : > { %2708 = vmatpush1.bf16.msra.mxu1 %v2281_v24  ;;  %2656 = vmatprep.subr.bf16.mxu0 %v2264_v21 }
 0x257   : > { %2709 = vmatprep.subr.bf16.mxu1 %v2266_v58  ;;  %2674 = vmatprep.mubr.bf16.mxu0 %v5095_v37 }
 0x258   : > { %2727 = vmatprep.mubr.bf16.mxu1 %v5095_v37 }
 0x259   : > { %2657 = vmatpush1.bf16.msra.mxu0 %v2263_v10 }
 0x25a   : > { %2710 = vmatpush1.bf16.msra.mxu1 %v2265_v12 }
 0x25c   : > { %3750 = vmatmul.mubr.msk.bf16.vlgmr.msra.gmra.mxu0 %vm1751_vm3, %v4572_v44 }
 0x25d   : > { %3752 = vmatmul.mubr.msk.bf16.vlgmr.msra.gmra.mxu1 %vm1751_vm3, %v4572_v44  ;;  %2684 = vmatprep.mubr.bf16.mxu0 %v5095_v37  ;;  %v4689_v44 = vpop.permute.xlu0 %2300 }
 0x25e   : > { %2737 = vmatprep.mubr.bf16.mxu1 %v5095_v37 }
 0x264   : > { %3751 = vmatmul.mubr.msk.bf16.gmra.mxu0 %vm1751_vm3, %v4597_v54 }
 0x265   : > { %3753 = vmatmul.mubr.msk.bf16.gmra.mxu1 %vm1751_vm3, %v4597_v54  ;;  %2886 = vmatprep.mubr.bf16.mxu0 %v5095_v37  ;;  %v4693_v54 = vpop.permute.xlu0 %2290 }
 0x266   : > { %2927 = vmatprep.mubr.bf16.mxu1 %v5095_v37 }
 0x2ea   : > { %v2358_v29 = vpop.f32.mrf.mxu0 }
 0x2eb   : > { %v2411_v35 = vpop.f32.mrf.mxu1  ;;  %v2359_v43 = vadd.f32 %v2358_v29, %v4693_v54 }
 0x2ec   : > { %v2360_v1 = vpop.f32.mrf.mxu0  ;;  %v2412_v23 = vadd.f32 %v2411_v35, %v4693_v54 }
 0x2ed   : > { %v2413_v22 = vpop.f32.mrf.mxu1  ;;  %v2361_v7 = vadd.f32 %v2360_v1, %v4693_v54  ;;  %v2748_v50 = vmax.f32 %v2359_v43, 0.0 }
 0x2ee   : > { %v2362_v17 = vpop.f32.mrf.mxu0  ;;  %v2414_v6 = vadd.f32 %v2413_v22, %v4693_v54  ;;  %v2750_v29 = vmax.f32 %v2412_v23, 0.0 }
 0x2ef   : > { %v2415_v51 = vpop.f32.mrf.mxu1  ;;  %v2363_v19 = vadd.f32 %v2362_v17, %v4695_v38  ;;  %v2749_v11 = vmax.f32 %v2361_v7, 0.0 }
 0x2f0   : > { %v2364_v52 = vpop.f32.mrf.mxu0  ;;  %v2416_v31 = vadd.f32 %v2415_v51, %v4695_v38  ;;  %v2751_v49 = vmax.f32 %v2414_v6, 0.0 }
 0x2f1   : > { %v2417_v28 = vpop.f32.mrf.mxu1  ;;  %v2365_v59 = vadd.f32 %v2364_v52, %v4695_v38  ;;  %v2764_v0 = vmax.f32 %v2363_v19, 0.0 }
 0x2f2   : > { %v2368_v33 = vpop.f32.mrf.mxu0  ;;  %v2418_v53 = vadd.f32 %v2417_v28, %v4695_v38  ;;  %v2766_v21 = vmax.f32 %v2416_v31, 0.0  ;;  %v4718_v28 = vld [vmem:[%s5066_s7] sm:$0xf] }
 0x2f3   : > { %v2421_v39 = vpop.f32.mrf.mxu1  ;;  %v2369_v16 = vadd.f32 %v2368_v33, %v4689_v44  ;;  %v2765_v57 = vmax.f32 %v2365_v59, 0.0  ;;  %v2813_v1 = vpack.c.bf16 %v2764_v0, %v2748_v50 }
 0x2f4   : > { %v2370_v13 = vpop.f32.mrf.mxu0  ;;  %v2422_v18 = vadd.f32 %v2421_v39, %v4689_v44  ;;  %v2767_v45 = vmax.f32 %v2418_v53, 0.0  ;;  %v2815_v17 = vpack.c.bf16 %v2766_v21, %v2750_v29 }
 0x2f5   : > { %v2423_v47 = vpop.f32.mrf.mxu1  ;;  %v2371_v14 = vadd.f32 %v2370_v13, %v4689_v44  ;;  %v2780_v15 = vmax.f32 %v2369_v16, 0.0  ;;  %v2814_v24 = vpack.c.bf16 %v2765_v57, %v2749_v11 }
 0x2f6   : > { %v2372_v2 = vpop.f32.mrf.mxu0  ;;  %v2424_v3 = vadd.f32 %v2423_v47, %v4689_v44  ;;  %v2782_v5 = vmax.f32 %v2422_v18, 0.0  ;;  %v2816_v10 = vpack.c.bf16 %v2767_v45, %v2751_v49 }
 0x2f7   : > { %v2373_v63 = vadd.f32 %v2372_v2, %v4691_v8  ;;  %v2425_v41 = vpop.f32.mrf.mxu1  ;;  %v2781_v61 = vmax.f32 %v2371_v14, 0.0 }
 0x2f8   : > { %v2426_v60 = vadd.f32 %v2425_v41, %v4691_v8  ;;  %v2374_v4 = vpop.f32.mrf.mxu0  ;;  %v2783_v62 = vmax.f32 %v2424_v3, 0.0 }
 0x2f9   : > { %v2375_v48 = vadd.f32 %v2374_v4, %v4691_v8  ;;  %v2427_v27 = vpop.f32.mrf.mxu1  ;;  %v2796_v26 = vmax.f32 %v2373_v63, 0.0 }
 0x2fa   : > { %v2428_v40 = vadd.f32 %v2427_v27, %v4691_v8  ;;  %v2798_v9 = vmax.f32 %v2426_v60, 0.0 }
 0x2fb   : > { %v2797_v25 = vmax.f32 %v2375_v48, 0.0  ;;  %v2464_v36 = vpop.f32.mrf.mxu0  ;;  %v2829_v34 = vpack.c.bf16 %v2796_v26, %v2780_v15 }
 0x2fc   : > { %v2799_v20 = vmax.f32 %v2428_v40, 0.0  ;;  %v4712_v30 = vpop.f32.mrf.mxu1  ;;  %v2831_v55 = vpack.c.bf16 %v2798_v9, %v2782_v5  ;;  %v2465_v13 = vadd.f32 %v2464_v36, %v4693_v54 }
 0x2fd   : > { %v2830_v56 = vpack.c.bf16 %v2797_v25, %v2781_v61  ;;  %v2466_v42 = vpop.f32.mrf.mxu0 }
 0x2fe   : > { %v2832_v32 = vpack.c.bf16 %v2799_v20, %v2783_v62  ;;  %v2519_v46 = vpop.f32.mrf.mxu1  ;;  %v2467_v60 = vadd.f32 %v2466_v42, %v4693_v54  ;;  %v2518_v20 = vadd.f32 %v4712_v30, %v4693_v54  ;;  %v2752_v50 = vmax.f32 %v2465_v13, 0.0 }
 0x2ff   : > { %v2468_v58 = vpop.f32.mrf.mxu0  ;;  %2866 = vmatprep.subr.bf16.mxu0 %v2830_v56  ;;  %v2520_v4 = vadd.f32 %v2519_v46, %v4693_v54 }
 0x300   : > { %v2521_v12 = vpop.f32.mrf.mxu1  ;;  %2907 = vmatprep.subr.bf16.mxu1 %v2832_v32  ;;  %2867 = vmatpush1.bf16.msra.mxu0 %v2829_v34  ;;  %v2469_v48 = vadd.f32 %v2468_v58, %v4695_v38  ;;  %v2753_v23 = vmax.f32 %v2467_v60, 0.0  ;;  %v2754_v30 = vmax.f32 %v2518_v20, 0.0 }
 0x301   : > { %v2470_v35 = vpop.f32.mrf.mxu0  ;;  %2908 = vmatpush1.bf16.msra.mxu1 %v2831_v55  ;;  %2868 = vmatprep.subr.bf16.mxu0 %v2814_v24  ;;  %v2522_v27 = vadd.f32 %v2521_v12, %v4695_v38  ;;  %v2755_v49 = vmax.f32 %v2520_v4, 0.0 }
 0x302   : > { %v2523_v22 = vpop.f32.mrf.mxu1  ;;  %2909 = vmatprep.subr.bf16.mxu1 %v2816_v10  ;;  %v2471_v2 = vadd.f32 %v2470_v35, %v4695_v38  ;;  %v2768_v0 = vmax.f32 %v2469_v48, 0.0 }
 0x303   : > { %v2474_v51 = vpop.f32.mrf.mxu0  ;;  %v2524_v63 = vadd.f32 %v2523_v22, %v4695_v38  ;;  %v2770_v46 = vmax.f32 %v2522_v27, 0.0 }
 0x304   : > { %v2527_v52 = vpop.f32.mrf.mxu1  ;;  %2869 = vmatpush1.bf16.msra.mxu0 %v2813_v1  ;;  %v2475_v41 = vadd.f32 %v2474_v51, %v4689_v44  ;;  %v2769_v26 = vmax.f32 %v2471_v2, 0.0  ;;  %v2817_v35 = vpack.c.bf16 %v2768_v0, %v2752_v50 }
 0x305   : > { %v2476_v33 = vpop.f32.mrf.mxu0  ;;  %2910 = vmatpush1.bf16.msra.mxu1 %v2815_v17  ;;  %v2528_v7 = vadd.f32 %v2527_v52, %v4689_v44  ;;  %v2771_v36 = vmax.f32 %v2524_v63, 0.0  ;;  %v2819_v1 = vpack.c.bf16 %v2770_v46, %v2754_v30 }
 0x306   : > { %v2529_v39 = vpop.f32.mrf.mxu1  ;;  %v2477_v43 = vadd.f32 %v2476_v33, %v4689_v44  ;;  %v2784_v45 = vmax.f32 %v2475_v41, 0.0  ;;  %v2818_v21 = vpack.c.bf16 %v2769_v26, %v2753_v23 }
 0x307   : > { %v2478_v47 = vpop.f32.mrf.mxu0  ;;  %3754 = vmatmul.mubr.msk.bf16.vlgmr.msra.gmra.mxu0 %vm1751_vm3, %v4718_v28  ;;  %v2530_v53 = vadd.f32 %v2529_v39, %v4689_v44  ;;  %v2786_v11 = vmax.f32 %v2528_v7, 0.0  ;;  %v2820_v10 = vpack.c.bf16 %v2771_v36, %v2755_v49 }
 0x308   : > { %v2479_v59 = vadd.f32 %v2478_v47, %v4691_v8  ;;  %v2531_v14 = vpop.f32.mrf.mxu1  ;;  %3755 = vmatmul.mubr.msk.bf16.vlgmr.msra.gmra.mxu1 %vm1751_vm3, %v4718_v28  ;;  %2968 = vmatprep.mubr.bf16.mxu0 %v5095_v37  ;;  %v2785_v40 = vmax.f32 %v2477_v43, 0.0 }
 0x309   : > { %v2532_v16 = vadd.f32 %v2531_v14, %v4691_v8  ;;  %v2480_v3 = vpop.f32.mrf.mxu0  ;;  %3009 = vmatprep.mubr.bf16.mxu1 %v5095_v37  ;;  %v2787_v15 = vmax.f32 %v2530_v53, 0.0 }
 0x30a   : > { %v2481_v6 = vadd.f32 %v2480_v3, %v4691_v8  ;;  %v2533_v18 = vpop.f32.mrf.mxu1  ;;  %v2800_v19 = vmax.f32 %v2479_v59, 0.0 }
 0x30b   : > { %v2534_v31 = vadd.f32 %v2533_v18, %v4691_v8  ;;  %v2802_v57 = vmax.f32 %v2532_v16, 0.0 }
 0x30c   : > { %v2801_v61 = vmax.f32 %v2481_v6, 0.0  ;;  %v4741_v9 = vpop.f32.mrf.mxu0  ;;  %v4743_v25 = vpop.f32.mrf.mxu1  ;;  %v2833_v34 = vpack.c.bf16 %v2800_v19, %v2784_v45 }
 0x30d   : > { %v2803_v62 = vmax.f32 %v2534_v31, 0.0  ;;  %v2835_v24 = vpack.c.bf16 %v2802_v57, %v2786_v11 }
 0x30e   : > { %v2834_v5 = vpack.c.bf16 %v2801_v61, %v2785_v40  ;;  %v2572_v56 = vpop.f32.mrf.mxu0  ;;  %v2625_v42 = vpop.f32.mrf.mxu1 }
 0x30f   : > { %v2836_v32 = vpack.c.bf16 %v2803_v62, %v2787_v15  ;;  %v2573_v63 = vadd.f32 %v2572_v56, %v4693_v54  ;;  %v2626_v41 = vadd.f32 %v2625_v42, %v4693_v54  ;;  %v2571_v15 = vadd.f32 %v4741_v9, %v4693_v54 }
 0x310   : > { %v2574_v55 = vpop.f32.mrf.mxu0  ;;  %v2627_v58 = vpop.f32.mrf.mxu1  ;;  %2948 = vmatprep.subr.bf16.mxu0 %v2834_v5  ;;  %v2624_v62 = vadd.f32 %v4743_v25, %v4693_v54 }
 0x311   : > { %2989 = vmatprep.subr.bf16.mxu1 %v2836_v32  ;;  %2949 = vmatpush1.bf16.msra.mxu0 %v2833_v34  ;;  %v2575_v4 = vadd.f32 %v2574_v55, %v4695_v38  ;;  %v2628_v7 = vadd.f32 %v2627_v58, %v4695_v38  ;;  %v2757_v5 = vmax.f32 %v2573_v63, 0.0  ;;  %v2759_v56 = vmax.f32 %v2626_v41, 0.0 }
 0x312   : > { %v2576_v12 = vpop.f32.mrf.mxu0  ;;  %v2629_v29 = vpop.f32.mrf.mxu1  ;;  %2990 = vmatpush1.bf16.msra.mxu1 %v2835_v24  ;;  %2950 = vmatprep.subr.bf16.mxu0 %v2818_v21  ;;  %v2756_v9 = vmax.f32 %v2571_v15, 0.0  ;;  %v2758_v25 = vmax.f32 %v2624_v62, 0.0 }
 0x313   : > { %2991 = vmatprep.subr.bf16.mxu1 %v2820_v10  ;;  %v2577_v33 = vadd.f32 %v2576_v12, %v4695_v38  ;;  %v2630_v39 = vadd.f32 %v2629_v29, %v4695_v38  ;;  %v2772_v34 = vmax.f32 %v2575_v4, 0.0  ;;  %v2774_v32 = vmax.f32 %v2628_v7, 0.0 }
 0x314   : > { %v2580_v22 = vpop.f32.mrf.mxu0  ;;  %v2633_v17 = vpop.f32.mrf.mxu1 }
 0x315   : > { %2951 = vmatpush1.bf16.msra.mxu0 %v2817_v35  ;;  %v2581_v53 = vadd.f32 %v2580_v22, %v4689_v44  ;;  %v2634_v16 = vadd.f32 %v2633_v17, %v4689_v44  ;;  %v2773_v48 = vmax.f32 %v2577_v33, 0.0  ;;  %v2775_v27 = vmax.f32 %v2630_v39, 0.0 }
 0x316   : > { %v2582_v51 = vpop.f32.mrf.mxu0  ;;  %v2635_v52 = vpop.f32.mrf.mxu1  ;;  %2992 = vmatpush1.bf16.msra.mxu1 %v2819_v1  ;;  %v2821_v12 = vpack.c.bf16 %v2772_v34, %v2756_v9  ;;  %v2823_v29 = vpack.c.bf16 %v2774_v32, %v2758_v25 }
 0x317   : > { %v2583_v13 = vadd.f32 %v2582_v51, %v4689_v44  ;;  %v2636_v43 = vadd.f32 %v2635_v52, %v4689_v44  ;;  %v2788_v20 = vmax.f32 %v2581_v53, 0.0  ;;  %v2790_v23 = vmax.f32 %v2634_v16, 0.0 }
 0x318   : > { %v2584_v47 = vpop.f32.mrf.mxu0  ;;  %v2637_v2 = vpop.f32.mrf.mxu1  ;;  %3756 = vmatmul.mubr.msk.bf16.vlgmr.msra.gmra.mxu0 %vm1751_vm3, %v4718_v28  ;;  %v2822_v55 = vpack.c.bf16 %v2773_v48, %v2757_v5  ;;  %v2824_v58 = vpack.c.bf16 %v2775_v27, %v2759_v56 }
 0x319   : > { %v2585_v59 = vadd.f32 %v2584_v47, %v4691_v8  ;;  %v2638_v14 = vadd.f32 %v2637_v2, %v4691_v8  ;;  %3757 = vmatmul.mubr.msk.bf16.vlgmr.msra.gmra.mxu1 %vm1751_vm3, %v4718_v28  ;;  %3050 = vmatprep.mubr.bf16.mxu0 %v5095_v37  ;;  %v2789_v40 = vmax.f32 %v2583_v13, 0.0  ;;  %v2791_v57 = vmax.f32 %v2636_v43, 0.0 }
 0x31a   : > { %v2586_v3 = vpop.f32.mrf.mxu0  ;;  %v2639_v60 = vpop.f32.mrf.mxu1  ;;  %3091 = vmatprep.mubr.bf16.mxu1 %v5095_v37 }
 0x31b   : > { %v2587_v6 = vadd.f32 %v2586_v3, %v4691_v8  ;;  %v2640_v18 = vadd.f32 %v2639_v60, %v4691_v8  ;;  %v2804_v19 = vmax.f32 %v2585_v59, 0.0  ;;  %v2806_v31 = vmax.f32 %v2638_v14, 0.0 }
 0x31c   : > { %v2676_v26 = vpop.f32.mrf.mxu0 }
 0x31d   : > { %v2805_v61 = vmax.f32 %v2587_v6, 0.0  ;;  %v2807_v36 = vmax.f32 %v2640_v18, 0.0  ;;  %v4767_v45 = vpop.f32.mrf.mxu1  ;;  %v2837_v46 = vpack.c.bf16 %v2804_v19, %v2788_v20  ;;  %v2839_v21 = vpack.c.bf16 %v2806_v31, %v2790_v23 }
 0x31e   : > { %v2678_v11 = vpop.f32.mrf.mxu0  ;;  %v2677_v51 = vadd.f32 %v2676_v26, %v4693_v54 }
 0x31f   : > { %v2838_v42 = vpack.c.bf16 %v2805_v61, %v2789_v40  ;;  %v2840_v49 = vpack.c.bf16 %v2807_v36, %v2791_v57  ;;  %v2731_v0 = vpop.f32.mrf.mxu1  ;;  %v2679_v41 = vadd.f32 %v2678_v11, %v4693_v54 }
 0x320   : > { %v2680_v24 = vpop.f32.mrf.mxu0  ;;  %v2732_v53 = vadd.f32 %v2731_v0, %v4693_v54  ;;  %v2760_v56 = vmax.f32 %v2677_v51, 0.0 }
 0x321   : > { %v2733_v50 = vpop.f32.mrf.mxu1  ;;  %3030 = vmatprep.subr.bf16.mxu0 %v2838_v42  ;;  %3071 = vmatprep.subr.bf16.mxu1 %v2840_v49  ;;  %v2681_v4 = vadd.f32 %v2680_v24, %v4695_v38  ;;  %v2761_v61 = vmax.f32 %v2679_v41, 0.0 }
 0x322   : > { %v2682_v10 = vpop.f32.mrf.mxu0  ;;  %3031 = vmatpush1.bf16.msra.mxu0 %v2837_v46  ;;  %3072 = vmatpush1.bf16.msra.mxu1 %v2839_v21  ;;  %v2734_v7 = vadd.f32 %v2733_v50, %v4695_v38  ;;  %v2763_v62 = vmax.f32 %v2732_v53, 0.0 }
 0x323   : > { %v2735_v30 = vpop.f32.mrf.mxu1  ;;  %3032 = vmatprep.subr.bf16.mxu0 %v2822_v55  ;;  %3073 = vmatprep.subr.bf16.mxu1 %v2824_v58  ;;  %v2683_v52 = vadd.f32 %v2682_v10, %v4695_v38  ;;  %v2776_v20 = vmax.f32 %v2681_v4, 0.0 }
 0x324   : > { %v2686_v35 = vpop.f32.mrf.mxu0  ;;  %v2736_v39 = vadd.f32 %v2735_v30, %v4695_v38  ;;  %v2778_v11 = vmax.f32 %v2734_v7, 0.0 }
 0x325   : > { %v2739_v1 = vpop.f32.mrf.mxu1  ;;  %v2687_v43 = vadd.f32 %v2686_v35, %v4689_v44  ;;  %v2777_v48 = vmax.f32 %v2683_v52, 0.0  ;;  %v2825_v0 = vpack.c.bf16 %v2776_v20, %v2760_v56 }
 0x326   : > { %v2688_v22 = vpop.f32.mrf.mxu0  ;;  %3033 = vmatpush1.bf16.msra.mxu0 %v2821_v12  ;;  %3074 = vmatpush1.bf16.msra.mxu1 %v2823_v29  ;;  %v2740_v16 = vadd.f32 %v2739_v1, %v4689_v44  ;;  %v2779_v31 = vmax.f32 %v2736_v39, 0.0 }
 0x327   : > { %v2741_v17 = vpop.f32.mrf.mxu1  ;;  %v2689_v13 = vadd.f32 %v2688_v22, %v4689_v44  ;;  %v2792_v26 = vmax.f32 %v2687_v43, 0.0 }
 0x328   : > { %v2690_v33 = vpop.f32.mrf.mxu0  ;;  %v2742_v59 = vadd.f32 %v2741_v17, %v4689_v44  ;;  %v2730_v44 = vadd.f32 %v4767_v45, %v4693_v54  ;;  %v2794_v36 = vmax.f32 %v2740_v16, 0.0  ;;  %v2828_v42 = vpack.c.bf16 %v2779_v31, %v2763_v62  ;;  %v4800_v45 = vpop.permute.xlu0 %2848 }
 0x329   : > { %v2691_v47 = vadd.f32 %v2690_v33, %v4691_v8  ;;  %v2743_v2 = vpop.f32.mrf.mxu1  ;;  %3758 = vmatmul.mubr.msk.bf16.vlgmr.msra.gmra.mxu0 %vm1751_vm3, %v4718_v28  ;;  %3759 = vmatmul.mubr.msk.bf16.vlgmr.msra.gmra.mxu1 %vm1751_vm3, %v4718_v28  ;;  %v2793_v27 = vmax.f32 %v2689_v13, 0.0 }
 0x32a   : > { %v2744_v14 = vadd.f32 %v2743_v2, %v4691_v8  ;;  %v2692_v63 = vpop.f32.mrf.mxu0  ;;  %3132 = vmatprep.mubr.bf16.mxu0 %v5095_v37  ;;  %3173 = vmatprep.mubr.bf16.mxu1 %v5095_v37  ;;  %v2795_v40 = vmax.f32 %v2742_v59, 0.0  ;;  %v2762_v49 = vmax.f32 %v2730_v44, 0.0 }
 0x32b   : > { %v2693_v3 = vadd.f32 %v2692_v63, %v4691_v8  ;;  %v2745_v60 = vpop.f32.mrf.mxu1  ;;  %v2808_v6 = vmax.f32 %v2691_v47, 0.0 }
 0x32c   : > { %v2746_v18 = vadd.f32 %v2745_v60, %v4691_v8  ;;  %v2810_v19 = vmax.f32 %v2744_v14, 0.0  ;;  %v2826_v8 = vpack.c.bf16 %v2777_v48, %v2761_v61  ;;  %v2827_v54 = vpack.c.bf16 %v2778_v11, %v2762_v49 }
 0x32d   : > { %v2809_v37 = vmax.f32 %v2693_v3, 0.0  ;;  %v2841_v38 = vpack.c.bf16 %v2808_v6, %v2792_v26 }
 0x32e   : > { %v2811_v57 = vmax.f32 %v2746_v18, 0.0  ;;  %v2843_v5 = vpack.c.bf16 %v2810_v19, %v2794_v36 }
 0x32f   : > { %v2842_v15 = vpack.c.bf16 %v2809_v37, %v2793_v27 }
 0x330   : > { %v2844_v23 = vpack.c.bf16 %v2811_v57, %v2795_v40 }
 0x331   : > { %3112 = vmatprep.subr.bf16.mxu0 %v2842_v15 }
 0x332   : > { %3153 = vmatprep.subr.bf16.mxu1 %v2844_v23  ;;  %3113 = vmatpush1.bf16.msra.mxu0 %v2841_v38 }
 0x333   : > { %3154 = vmatpush1.bf16.msra.mxu1 %v2843_v5  ;;  %3114 = vmatprep.subr.bf16.mxu0 %v2826_v8 }
 0x334   : > { %3155 = vmatprep.subr.bf16.mxu1 %v2828_v42 }
 0x336   : > { %3115 = vmatpush1.bf16.msra.mxu0 %v2825_v0 }
 0x337   : > { %3156 = vmatpush1.bf16.msra.mxu1 %v2827_v54 }
 0x339   : > { %3760 = vmatmul.mubr.msk.bf16.vlgmr.msra.gmra.mxu0 %vm1751_vm3, %v4718_v28 }
 0x33a   : > { %3761 = vmatmul.mubr.msk.bf16.vlgmr.msra.gmra.mxu1 %vm1751_vm3, %v4718_v28 }
 0x3c7   : > { %v2888_v34 = vpop.f32.mrf.mxu0 }
 0x3c8   : > { %v2889_v32 = vadd.f32 %v2888_v34, %v4800_v45  ;;  %v2929_v46 = vpop.f32.mrf.mxu1 }
 0x3c9   : > { %v2930_v21 = vadd.f32 %v2929_v46, %v4800_v45  ;;  %v2890_v24 = vpop.f32.mrf.mxu0 }
 0x3ca   : > { %v3182_v55 = vrot.slane %v2889_v32, 4  ;;  %v2891_v58 = vadd.f32 %v2890_v24, %v4800_v45  ;;  %v2931_v50 = vpop.f32.mrf.mxu1 }
 0x3cb   : > { %v3194_v9 = vrot.slane %v2930_v21, 4  ;;  %v2932_v25 = vadd.f32 %v2931_v50, %v4800_v45  ;;  %v2892_v10 = vpop.f32.mrf.mxu0 }
 0x3cc   : > { %v3183_v30 = vadd.f32 %v3182_v55, %v2889_v32  ;;  %v3188_v12 = vrot.slane %v2891_v58, 4  ;;  %v2933_v28 = vpop.f32.mrf.mxu1 }
 0x3cd   : > { %v3195_v29 = vadd.f32 %v3194_v9, %v2930_v21  ;;  %v3200_v35 = vrot.slane %v2932_v25, 4  ;;  %v2893_v1 = vpop.f32.mrf.mxu0 }
 0x3ce   : > { %v3184_v22 = vrot.slane %v3183_v30, 2  ;;  %v3189_v17 = vadd.f32 %v3188_v12, %v2891_v58  ;;  %v2934_v51 = vpop.f32.mrf.mxu1 }
 0x3cf   : > { %v3196_v52 = vrot.slane %v3195_v29, 2  ;;  %v3201_v33 = vadd.f32 %v3200_v35, %v2932_v25 }
 0x3d0   : > { %v3185_v39 = vadd.f32 %v3184_v22, %v3183_v30  ;;  %v3190_v13 = vrot.slane %v3189_v17, 2 }
 0x3d1   : > { %v3197_v47 = vadd.f32 %v3196_v52, %v3195_v29  ;;  %v3202_v2 = vrot.slane %v3201_v33, 2 }
 0x3d2   : > { %v3186_v43 = vrot.slane %v3185_v39, 1  ;;  %v3191_v59 = vadd.f32 %v3190_v13, %v3189_v17 }
 0x3d3   : > { %v3198_v14 = vrot.slane %v3197_v47, 1  ;;  %v3203_v63 = vadd.f32 %v3202_v2, %v3201_v33 }
 0x3d4   : > { %v3187_v41 = vadd.f32 %v3186_v43, %v3185_v39  ;;  %v3192_v53 = vrot.slane %v3191_v59, 1 }
 0x3d5   : > { %v3199_v16 = vadd.f32 %v3198_v14, %v3197_v47  ;;  %v3204_v3 = vrot.slane %v3203_v63, 1 }
 0x3d6   : > { %v3279_v60 = vmul.f32 0.125, %v3187_v41  ;;  %v3193_v4 = vadd.f32 %v3192_v53, %v3191_v59 }
 0x3d7   : > { %v3281_v7 = vmul.f32 0.125, %v3199_v16  ;;  %v3205_v6 = vadd.f32 %v3204_v3, %v3203_v63 }
 0x3d8   : > { %v4806_v18 = vsub.f32 %v2889_v32, %v3279_v60  ;;  %v3280_v48 = vmul.f32 0.125, %v3193_v4  ;;  %v2970_v27 = vpop.f32.mrf.mxu0 }
 0x3d9   : > { %v4808_v19 = vsub.f32 %v2930_v21, %v3281_v7  ;;  %v3282_v37 = vmul.f32 0.125, %v3205_v6  ;;  %v4811_v31 = vadd.f32 %v2970_v27, %v4800_v45  ;;  %v3011_v26 = vpop.f32.mrf.mxu1 }
 0x3da   : > { %v3311_v40 = vmul.f32 %v4806_v18, %v4806_v18  ;;  %v4815_v57 = vsub.f32 %v2891_v58, %v3280_v48  ;;  %v4818_v44 = vadd.f32 %v3011_v26, %v4800_v45  ;;  %v2972_v61 = vpop.f32.mrf.mxu0 }
 0x3db   : > { %v3313_v36 = vmul.f32 %v4808_v19, %v4808_v19  ;;  %v4822_v15 = vsub.f32 %v2932_v25, %v3282_v37  ;;  %v3206_v62 = vrot.slane %v4811_v31, 4  ;;  %v4826_v20 = vadd.f32 %v2972_v61, %v4800_v45  ;;  %v3013_v38 = vpop.f32.mrf.mxu1 }
 0x3dc   : > { %v3327_v23 = vrot.slane %v3311_v40, 4  ;;  %v3312_v11 = vmul.f32 %v4815_v57, %v4815_v57  ;;  %v3218_v8 = vrot.slane %v4818_v44, 4  ;;  %v4832_v5 = vadd.f32 %v3013_v38, %v4800_v45  ;;  %v2974_v56 = vpop.f32.mrf.mxu0 }
 0x3dd   : > { %v3339_v42 = vrot.slane %v3313_v36, 4  ;;  %v3314_v49 = vmul.f32 %v4822_v15, %v4822_v15  ;;  %v3207_v0 = vadd.f32 %v3206_v62, %v4811_v31  ;;  %v3212_v54 = vrot.slane %v4826_v20, 4  ;;  %v3015_v34 = vpop.f32.mrf.mxu1 }
 0x3de   : > { %v3328_v32 = vadd.f32 %v3327_v23, %v3311_v40  ;;  %v3333_v46 = vrot.slane %v3312_v11, 4  ;;  %v3219_v21 = vadd.f32 %v3218_v8, %v4818_v44  ;;  %v3224_v24 = vrot.slane %v4832_v5, 4  ;;  %v2975_v55 = vpop.f32.mrf.mxu0 }
 0x3df   : > { %v3340_v58 = vadd.f32 %v3339_v42, %v3313_v36  ;;  %v3345_v50 = vrot.slane %v3314_v49, 4  ;;  %v3208_v9 = vrot.slane %v3207_v0, 2  ;;  %v3213_v25 = vadd.f32 %v3212_v54, %v4826_v20  ;;  %v3016_v10 = vpop.f32.mrf.mxu1 }
 0x3e0   : > { %v3329_v30 = vrot.slane %v3328_v32, 2  ;;  %v3334_v12 = vadd.f32 %v3333_v46, %v3312_v11  ;;  %v3220_v28 = vrot.slane %v3219_v21, 2  ;;  %v3225_v29 = vadd.f32 %v3224_v24, %v4832_v5 }
 0x3e1   : > { %v3341_v35 = vrot.slane %v3340_v58, 2  ;;  %v3346_v1 = vadd.f32 %v3345_v50, %v3314_v49  ;;  %v3209_v22 = vadd.f32 %v3208_v9, %v3207_v0  ;;  %v3214_v17 = vrot.slane %v3213_v25, 2 }
 0x3e2   : > { %v3330_v51 = vadd.f32 %v3329_v30, %v3328_v32  ;;  %v3335_v52 = vrot.slane %v3334_v12, 2  ;;  %v3221_v33 = vadd.f32 %v3220_v28, %v3219_v21  ;;  %v3226_v39 = vrot.slane %v3225_v29, 2 }
 0x3e3   : > { %v3342_v13 = vadd.f32 %v3341_v35, %v3340_v58  ;;  %v3347_v47 = vrot.slane %v3346_v1, 2  ;;  %v3210_v2 = vrot.slane %v3209_v22, 1  ;;  %v3215_v43 = vadd.f32 %v3214_v17, %v3213_v25 }
 0x3e4   : > { %v3331_v59 = vrot.slane %v3330_v51, 1  ;;  %v3336_v14 = vadd.f32 %v3335_v52, %v3334_v12  ;;  %v3222_v63 = vrot.slane %v3221_v33, 1  ;;  %v3227_v41 = vadd.f32 %v3226_v39, %v3225_v29 }
 0x3e5   : > { %v3343_v53 = vrot.slane %v3342_v13, 1  ;;  %v3348_v16 = vadd.f32 %v3347_v47, %v3346_v1  ;;  %v3211_v3 = vadd.f32 %v3210_v2, %v3209_v22  ;;  %v3216_v60 = vrot.slane %v3215_v43, 1 }
 0x3e6   : > { %v3332_v4 = vadd.f32 %v3331_v59, %v3330_v51  ;;  %v3337_v7 = vrot.slane %v3336_v14, 1  ;;  %v3223_v6 = vadd.f32 %v3222_v63, %v3221_v33  ;;  %v3228_v48 = vrot.slane %v3227_v41, 1 }
 0x3e7   : > { %v3344_v27 = vadd.f32 %v3343_v53, %v3342_v13  ;;  %v3349_v37 = vrot.slane %v3348_v16, 1  ;;  %v3283_v26 = vmul.f32 0.125, %v3211_v3  ;;  %v3217_v40 = vadd.f32 %v3216_v60, %v3215_v43 }
 0x3e8   : > { %v3423_v61 = vmul.f32 0.125, %v3332_v4  ;;  %v3338_v36 = vadd.f32 %v3337_v7, %v3336_v14  ;;  %v3285_v62 = vmul.f32 0.125, %v3223_v6  ;;  %v3229_v38 = vadd.f32 %v3228_v48, %v3227_v41 }
 0x3e9   : > { %v3425_v23 = vmul.f32 0.125, %v3344_v27  ;;  %v3350_v11 = vadd.f32 %v3349_v37, %v3348_v16  ;;  %v4843_v8 = vsub.f32 %v4811_v31, %v3283_v26  ;;  %v3284_v56 = vmul.f32 0.125, %v3217_v40  ;;  %v3052_v42 = vpop.f32.mrf.mxu0  ;;  %v3093_v49 = vpop.f32.mrf.mxu1 }
 0x3ea   : > { %v3439_v0 = vadd.f32 1e-05, %v3423_v61  ;;  %v3424_v54 = vmul.f32 0.125, %v3338_v36  ;;  %v4846_v34 = vsub.f32 %v4818_v44, %v3285_v62  ;;  %v3286_v32 = vmul.f32 0.125, %v3229_v38 }
 0x3eb   : > { %v3441_v46 = vadd.f32 1e-05, %v3425_v23  ;;  %v3426_v21 = vmul.f32 0.125, %v3350_v11  ;;  %v3315_v24 = vmul.f32 %v4843_v8, %v4843_v8  ;;  %v4851_v55 = vsub.f32 %v4826_v20, %v3284_v56  ;;  %v3054_v58 = vpop.f32.mrf.mxu0  ;;  %v3095_v31 = vpop.f32.mrf.mxu1 }
 0x3ec   : > { %3800 = vrsqrt.f32 %v3439_v0  ;;  %v3440_v50 = vadd.f32 1e-05, %v3424_v54  ;;  %v3317_v9 = vmul.f32 %v4846_v34, %v4846_v34  ;;  %v4856_v25 = vsub.f32 %v4832_v5, %v3286_v32 }
 0x3ed   : > { %3802 = vrsqrt.f32 %v3441_v46  ;;  %v3442_v44 = vadd.f32 1e-05, %v3426_v21  ;;  %v3351_v10 = vrot.slane %v3315_v24, 4  ;;  %v3316_v30 = vmul.f32 %v4851_v55, %v4851_v55  ;;  %v3056_v12 = vpop.f32.mrf.mxu0  ;;  %v3097_v28 = vpop.f32.mrf.mxu1 }
 0x3ee   : > { %3804 = vrsqrt.f32 %v3440_v50  ;;  %v3363_v20 = vrot.slane %v3317_v9, 4  ;;  %v3318_v29 = vmul.f32 %v4856_v25, %v4856_v25  ;;  %v4863_v35 = vadd.f32 %v3052_v42, %v4800_v45 }
 0x3ef   : > { %3806 = vrsqrt.f32 %v3442_v44  ;;  %v3352_v1 = vadd.f32 %v3351_v10, %v3315_v24  ;;  %v3357_v5 = vrot.slane %v3316_v30, 4  ;;  %v4866_v22 = vadd.f32 %v3093_v49, %v4800_v45  ;;  %v3057_v17 = vpop.f32.mrf.mxu0  ;;  %v3098_v51 = vpop.f32.mrf.mxu1 }
 0x3f0   : > { %v3364_v52 = vadd.f32 %v3363_v20, %v3317_v9  ;;  %v3369_v33 = vrot.slane %v3318_v29, 4  ;;  %v3230_v39 = vrot.slane %v4863_v35, 4  ;;  %v4870_v13 = vadd.f32 %v3054_v58, %v4800_v45 }
 0x3f1   : > { %v3353_v47 = vrot.slane %v3352_v1, 2  ;;  %v3358_v2 = vadd.f32 %v3357_v5, %v3316_v30  ;;  %v3242_v43 = vrot.slane %v4866_v22, 4  ;;  %v4874_v59 = vadd.f32 %v3095_v31, %v4800_v45 }
 0x3f2   : > { %v3365_v14 = vrot.slane %v3364_v52, 2  ;;  %v3370_v63 = vadd.f32 %v3369_v33, %v3318_v29  ;;  %v3231_v41 = vadd.f32 %v3230_v39, %v4863_v35  ;;  %v3236_v53 = vrot.slane %v4870_v13, 4 }
 0x3f3   : > { %v3354_v16 = vadd.f32 %v3353_v47, %v3352_v1  ;;  %v3359_v3 = vrot.slane %v3358_v2, 2  ;;  %v3243_v60 = vadd.f32 %v3242_v43, %v4866_v22  ;;  %v3248_v4 = vrot.slane %v4874_v59, 4  ;;  %v4887_v1 = vpop.permute.xlu1 %3490 }
 0x3f4   : > { %v3366_v7 = vadd.f32 %v3365_v14, %v3364_v52  ;;  %v3371_v6 = vrot.slane %v3370_v63, 2  ;;  %v3232_v48 = vrot.slane %v3231_v41, 2  ;;  %v3237_v27 = vadd.f32 %v3236_v53, %v4870_v13 }
 0x3f5   : > { %v3355_v37 = vrot.slane %v3354_v16, 1  ;;  %v3360_v26 = vadd.f32 %v3359_v3, %v3358_v2  ;;  %v3244_v40 = vrot.slane %v3243_v60, 2  ;;  %v3249_v61 = vadd.f32 %v3248_v4, %v4874_v59 }
 0x3f6   : > { %v3367_v36 = vrot.slane %v3366_v7, 1  ;;  %v3372_v62 = vadd.f32 %v3371_v6, %v3370_v63  ;;  %v3233_v38 = vadd.f32 %v3232_v48, %v3231_v41  ;;  %v3238_v23 = vrot.slane %v3237_v27, 2  ;;  %v4892_v63 = vpop.permute.xlu0 %3512 }
 0x3f7   : > { %v3356_v11 = vadd.f32 %v3355_v37, %v3354_v16  ;;  %v3361_v56 = vrot.slane %v3360_v26, 1  ;;  %v3245_v42 = vadd.f32 %v3244_v40, %v3243_v60  ;;  %v3250_v49 = vrot.slane %v3249_v61, 2 }
 0x3f8   : > { %v3368_v0 = vadd.f32 %v3367_v36, %v3366_v7  ;;  %v3373_v54 = vrot.slane %v3372_v62, 1  ;;  %v3234_v32 = vrot.slane %v3233_v38, 1  ;;  %v4882_v46 = vadd.f32 %v3238_v23, %v3237_v27  ;;  %v3832_v27 = vld [vmem:[%s4004_s22] sm:$0xff]  ;;  %v3833_v36 = vld [vmem:[%s4004_s22 + $0x10] sm:$0xff] }
 0x3f9   : > { %v3801_v21 = vpop.eup %3800  ;;  %v3427_v24 = vmul.f32 0.125, %v3356_v11  ;;  %v3362_v58 = vadd.f32 %v3361_v56, %v3360_v26  ;;  %v3246_v31 = vrot.slane %v3245_v42, 1  ;;  %v4884_v50 = vadd.f32 %v3250_v49, %v3249_v61  ;;  %v3134_v9 = vpop.f32.mrf.mxu0  ;;  %v3834_v56 = vld [vmem:[%s4004_s22 + $0x8] sm:$0xff] }
 0x3fa   : > { %v3803_v44 = vpop.eup %3802  ;;  %v3471_v10 = vmul.f32 %v3801_v21, %v4806_v18  ;;  %v3429_v30 = vmul.f32 0.125, %v3368_v0  ;;  %v3374_v12 = vadd.f32 %v3373_v54, %v3372_v62  ;;  %v3235_v28 = vadd.f32 %v3234_v32, %v3233_v38  ;;  %v3175_v20 = vpop.f32.mrf.mxu1  ;;  %v3835_v32 = vld [vmem:[%s4004_s22 + $0x18] sm:$0xff] }
 0x3fb   : > { %v3805_v29 = vpop.eup %3804  ;;  %v3473_v5 = vmul.f32 %v3803_v44, %v4808_v19  ;;  %v3443_v17 = vadd.f32 1e-05, %v3427_v24  ;;  %v3428_v51 = vmul.f32 0.125, %v3362_v58  ;;  %v3247_v52 = vadd.f32 %v3246_v31, %v3245_v42  ;;  %v3136_v33 = vpop.f32.mrf.mxu0 }
 0x3fc   : > { %v3807_v39 = vpop.eup %3806  ;;  %v3493_v47 = vmul.f32 %v4887_v1, %v3471_v10  ;;  %v3472_v2 = vmul.f32 %v3805_v29, %v4815_v57  ;;  %v3445_v18 = vadd.f32 1e-05, %v3429_v30  ;;  %v3430_v43 = vmul.f32 0.125, %v3374_v12  ;;  %v3177_v14 = vpop.f32.mrf.mxu1 }
 0x3fd   : > { %v3495_v41 = vmul.f32 %v4887_v1, %v3473_v5  ;;  %v3474_v19 = vmul.f32 %v3807_v39, %v4822_v15  ;;  %3808 = vrsqrt.f32 %v3443_v17  ;;  %v3444_v53 = vadd.f32 1e-05, %v3428_v51  ;;  %v3138_v16 = vpop.f32.mrf.mxu0 }
 0x3fe   : > { %v3515_v3 = vadd.f32 %v4892_v63, %v3493_v47  ;;  %v3494_v60 = vmul.f32 %v4887_v1, %v3472_v2  ;;  %3810 = vrsqrt.f32 %v3445_v18  ;;  %v3446_v57 = vadd.f32 1e-05, %v3430_v43  ;;  %v3179_v4 = vpop.f32.mrf.mxu1 }
 0x3ff   : > { %v3517_v7 = vadd.f32 %v4892_v63, %v3495_v41  ;;  %v3496_v15 = vmul.f32 %v4887_v1, %v3474_v19  ;;  %3812 = vrsqrt.f32 %v3444_v53  ;;  %v3287_v6 = vmul.f32 0.125, %v3235_v28  ;;  %v3139_v48 = vpop.f32.mrf.mxu0 }
 0x400   : > { %v3531_v37 = vadd.f32 %v3832_v27, %v3515_v3  ;;  %v3516_v26 = vadd.f32 %v4892_v63, %v3494_v60  ;;  %3814 = vrsqrt.f32 %v3446_v57  ;;  %v3289_v40 = vmul.f32 0.125, %v3247_v52  ;;  %v3180_v61 = vpop.f32.mrf.mxu1 }
 0x401   : > { %v3533_v62 = vadd.f32 %v3833_v36, %v3517_v7  ;;  %v3518_v38 = vadd.f32 %v4892_v63, %v3496_v15  ;;  %v4912_v23 = vsub.f32 %v4863_v35, %v3287_v6  ;;  %v3240_v11 = vrot.slane %v4882_v46, 1 }
 0x402   : > { %3547 = vst [vmem:[%s4903_s25] sm:$0xff] %v3531_v37  ;;  %v3532_v42 = vadd.f32 %v3834_v56, %v3516_v26  ;;  %v4918_v49 = vsub.f32 %v4866_v22, %v3289_v40  ;;  %v3252_v0 = vrot.slane %v4884_v50, 1  ;;  %v4922_v54 = vadd.f32 %v3134_v9, %v4800_v45 }
 0x403   : > { %3549 = vst [vmem:[%s4903_s25 + $0x10] sm:$0xff] %v3533_v62  ;;  %v3534_v21 = vadd.f32 %v3835_v32, %v3518_v38  ;;  %v3319_v35 = vmul.f32 %v4912_v23, %v4912_v23  ;;  %v3241_v24 = vadd.f32 %v3240_v11, %v4882_v46  ;;  %v4930_v58 = vadd.f32 %v3175_v20, %v4800_v45 }
 0x404   : > { %3548 = vst [vmem:[%s4903_s25 + $0x8] sm:$0xff] %v3532_v42  ;;  %v3321_v22 = vmul.f32 %v4918_v49, %v4918_v49  ;;  %v3253_v31 = vadd.f32 %v3252_v0, %v4884_v50  ;;  %v3254_v9 = vrot.slane %v4922_v54, 4  ;;  %v4938_v44 = vadd.f32 %v3136_v33, %v4800_v45 }
 0x405   : > { %3550 = vst [vmem:[%s4903_s25 + $0x18] sm:$0xff] %v3534_v21  ;;  %v3375_v10 = vrot.slane %v3319_v35, 4  ;;  %v3288_v30 = vmul.f32 0.125, %v3241_v24  ;;  %v3266_v12 = vrot.slane %v4930_v58, 4  ;;  %v4943_v46 = vadd.f32 %v3177_v14, %v4800_v45  ;;  %v3836_v24 = vld [vmem:[%s4004_s22 + $0x20] sm:$0xff] }
 0x406   : > { %v3387_v28 = vrot.slane %v3321_v22, 4  ;;  %v3290_v20 = vmul.f32 0.125, %v3253_v31  ;;  %v3255_v29 = vadd.f32 %v3254_v9, %v4922_v54  ;;  %v3260_v5 = vrot.slane %v4938_v44, 4 }
 0x407   : > { %v3376_v50 = vadd.f32 %v3375_v10, %v3319_v35  ;;  %v4948_v17 = vsub.f32 %v4870_v13, %v3288_v30  ;;  %v3267_v51 = vadd.f32 %v3266_v12, %v4930_v58  ;;  %v3272_v52 = vrot.slane %v4943_v46, 4  ;;  %v3837_v10 = vld [vmem:[%s4004_s22 + $0x30] sm:$0xff] }
 0x408   : > { %v3388_v33 = vadd.f32 %v3387_v28, %v3321_v22  ;;  %v4953_v39 = vsub.f32 %v4874_v59, %v3290_v20  ;;  %v3256_v45 = vrot.slane %v3255_v29, 2  ;;  %v4956_v47 = vadd.f32 %v3260_v5, %v4938_v44 }
 0x409   : > { %v3377_v2 = vrot.slane %v3376_v50, 2  ;;  %v3320_v18 = vmul.f32 %v4948_v17, %v4948_v17  ;;  %v3268_v43 = vrot.slane %v3267_v51, 2  ;;  %v4961_v13 = vadd.f32 %v3272_v52, %v4943_v46 }
 0x40a   : > { %v3809_v14 = vpop.eup %3808  ;;  %v3389_v41 = vrot.slane %v3388_v33, 2  ;;  %v3322_v19 = vmul.f32 %v4953_v39, %v4953_v39  ;;  %v3257_v53 = vadd.f32 %v3256_v45, %v3255_v29  ;;  %v3262_v59 = vrot.slane %v4956_v47, 2  ;;  %v3838_v29 = vld [vmem:[%s4004_s22 + $0x28] sm:$0xff] }
 0x40b   : > { %v3811_v16 = vpop.eup %3810  ;;  %v3475_v3 = vmul.f32 %v3809_v14, %v4843_v8  ;;  %v3378_v60 = vadd.f32 %v3377_v2, %v3376_v50  ;;  %v3381_v57 = vrot.slane %v3320_v18, 4  ;;  %v3269_v4 = vadd.f32 %v3268_v43, %v3267_v51 }
 0x40c   : > { %v3813_v7 = vpop.eup %3812  ;;  %v3477_v15 = vmul.f32 %v3811_v16, %v4846_v34  ;;  %v3390_v6 = vadd.f32 %v3389_v41, %v3388_v33  ;;  %v3393_v48 = vrot.slane %v3322_v19, 4  ;;  %v3258_v27 = vrot.slane %v3257_v53, 1  ;;  %v3839_v33 = vld [vmem:[%s4004_s22 + $0x38] sm:$0xff] }
 0x40d   : > { %v3815_v37 = vpop.eup %3814  ;;  %v3497_v26 = vmul.f32 %v4887_v1, %v3475_v3  ;;  %v3476_v40 = vmul.f32 %v3813_v7, %v4851_v55  ;;  %v3379_v61 = vrot.slane %v3378_v60, 1  ;;  %v3382_v36 = vadd.f32 %v3381_v57, %v3320_v18 }
 0x40e   : > { %v3499_v62 = vmul.f32 %v4887_v1, %v3477_v15  ;;  %v3478_v8 = vmul.f32 %v3815_v37, %v4856_v25  ;;  %v3391_v38 = vrot.slane %v3390_v6, 1  ;;  %v3394_v11 = vadd.f32 %v3393_v48, %v3322_v19 }
 0x40f   : > { %v3519_v34 = vadd.f32 %v4892_v63, %v3497_v26  ;;  %v3498_v56 = vmul.f32 %v4887_v1, %v3476_v40  ;;  %v3380_v42 = vadd.f32 %v3379_v61, %v3378_v60  ;;  %v3383_v0 = vrot.slane %v3382_v36, 2 }
 0x410   : > { %v3521_v32 = vadd.f32 %v4892_v63, %v3499_v62  ;;  %v3500_v55 = vmul.f32 %v4887_v1, %v3478_v8  ;;  %v3392_v21 = vadd.f32 %v3391_v38, %v3390_v6  ;;  %v3395_v35 = vrot.slane %v3394_v11, 2 }
 0x411   : > { %v3535_v25 = vadd.f32 %v3836_v24, %v3519_v34  ;;  %v3520_v22 = vadd.f32 %v4892_v63, %v3498_v56  ;;  %v3431_v31 = vmul.f32 0.125, %v3380_v42  ;;  %v3384_v9 = vadd.f32 %v3383_v0, %v3382_v36 }
 0x412   : > { %v3537_v30 = vadd.f32 %v3837_v10, %v3521_v32  ;;  %v3522_v12 = vadd.f32 %v4892_v63, %v3500_v55  ;;  %v3433_v28 = vmul.f32 0.125, %v3392_v21  ;;  %v3396_v20 = vadd.f32 %v3395_v35, %v3394_v11 }
 0x413   : > { %3551 = vst [vmem:[%s4903_s25 + $0x20] sm:$0xff] %v3535_v25  ;;  %v3536_v5 = vadd.f32 %v3838_v29, %v3520_v22  ;;  %v3447_v50 = vadd.f32 1e-05, %v3431_v31  ;;  %v3385_v51 = vrot.slane %v3384_v9, 1  ;;  %v3259_v52 = vadd.f32 %v3258_v27, %v3257_v53 }
 0x414   : > { %3553 = vst [vmem:[%s4903_s25 + $0x30] sm:$0xff] %v3537_v30  ;;  %v3538_v45 = vadd.f32 %v3839_v33, %v3522_v12  ;;  %v3449_v2 = vadd.f32 1e-05, %v3433_v28  ;;  %v3397_v18 = vrot.slane %v3396_v20, 1  ;;  %v3270_v43 = vrot.slane %v3269_v4, 1 }
 0x415   : > { %3552 = vst [vmem:[%s4903_s25 + $0x28] sm:$0xff] %v3536_v5  ;;  %3816 = vrsqrt.f32 %v3447_v50  ;;  %v3386_v14 = vadd.f32 %v3385_v51, %v3384_v9  ;;  %v3291_v41 = vmul.f32 0.125, %v3259_v52  ;;  %v3263_v19 = vadd.f32 %v3262_v59, %v4956_v47 }
 0x416   : > { %3554 = vst [vmem:[%s4903_s25 + $0x38] sm:$0xff] %v3538_v45  ;;  %3818 = vrsqrt.f32 %v3449_v2  ;;  %v3398_v16 = vadd.f32 %v3397_v18, %v3396_v20  ;;  %v3271_v3 = vadd.f32 %v3270_v43, %v3269_v4  ;;  %v3274_v60 = vrot.slane %v4961_v13, 2  ;;  %v3840_v45 = vld [vmem:[%s4004_s22 + $0x40] sm:$0xff] }
 0x417   : > { %v3432_v57 = vmul.f32 0.125, %v3386_v14  ;;  %v4989_v53 = vsub.f32 %v4922_v54, %v3291_v41  ;;  %v3264_v7 = vrot.slane %v3263_v19, 1  ;;  %v3841_v41 = vld [vmem:[%s4004_s22 + $0x50] sm:$0xff] }
 0x418   : > { %v3434_v15 = vmul.f32 0.125, %v3398_v16  ;;  %v3293_v6 = vmul.f32 0.125, %v3271_v3  ;;  %v3275_v48 = vadd.f32 %v3274_v60, %v4961_v13 }
 0x419   : > { %v3448_v27 = vadd.f32 1e-05, %v3432_v57  ;;  %v3323_v37 = vmul.f32 %v4989_v53, %v4989_v53  ;;  %v3265_v47 = vadd.f32 %v3264_v7, %v3263_v19 }
 0x41a   : > { %v3450_v59 = vadd.f32 1e-05, %v3434_v15  ;;  %v4995_v26 = vsub.f32 %v4930_v58, %v3293_v6  ;;  %v3276_v4 = vrot.slane %v3275_v48, 1 }
 0x41b   : > { %3820 = vrsqrt.f32 %v3448_v27  ;;  %v3399_v40 = vrot.slane %v3323_v37, 4  ;;  %v3292_v61 = vmul.f32 0.125, %v3265_v47  ;;  %v3842_v47 = vld [vmem:[%s4004_s22 + $0x48] sm:$0xff] }
 0x41c   : > { %3822 = vrsqrt.f32 %v3450_v59  ;;  %v3325_v54 = vmul.f32 %v4995_v26, %v4995_v26  ;;  %v3277_v36 = vadd.f32 %v3276_v4, %v3275_v48 }
 0x41d   : > { %v3400_v62 = vadd.f32 %v3399_v40, %v3323_v37  ;;  %v5000_v13 = vsub.f32 %v4938_v44, %v3292_v61  ;;  %v3843_v40 = vld [vmem:[%s4004_s22 + $0x58] sm:$0xff] }
 0x41e   : > { %v3411_v8 = vrot.slane %v3325_v54, 4  ;;  %v3294_v38 = vmul.f32 0.125, %v3277_v36 }
 0x41f   : > { %v3401_v11 = vrot.slane %v3400_v62, 2  ;;  %v3324_v58 = vmul.f32 %v5000_v13, %v5000_v13 }
 0x420   : > { %v3412_v34 = vadd.f32 %v3411_v8, %v3325_v54  ;;  %v5005_v56 = vsub.f32 %v4943_v46, %v3294_v38 }
 0x421   : > { %v3402_v42 = vadd.f32 %v3401_v11, %v3400_v62  ;;  %v3405_v0 = vrot.slane %v3324_v58, 4 }
 0x422   : > { %v3817_v32 = vpop.eup %3816  ;;  %v3413_v55 = vrot.slane %v3412_v34, 2  ;;  %v3326_v21 = vmul.f32 %v5005_v56, %v5005_v56 }
 0x423   : > { %v3819_v35 = vpop.eup %3818  ;;  %v3479_v44 = vmul.f32 %v3817_v32, %v4912_v23  ;;  %v3403_v24 = vrot.slane %v3402_v42, 1  ;;  %v3406_v25 = vadd.f32 %v3405_v0, %v3324_v58  ;;  %v3844_v32 = vld [vmem:[%s4004_s22 + $0x60] sm:$0xff] }
 0x424   : > { %v3481_v22 = vmul.f32 %v3819_v35, %v4918_v49  ;;  %v3414_v31 = vadd.f32 %v3413_v55, %v3412_v34  ;;  %v3417_v9 = vrot.slane %v3326_v21, 4 }
 0x425   : > { %v3501_v46 = vmul.f32 %v4887_v1, %v3479_v44  ;;  %v3404_v10 = vadd.f32 %v3403_v24, %v3402_v42  ;;  %v3407_v30 = vrot.slane %v3406_v25, 2 }
 0x426   : > { %v3503_v12 = vmul.f32 %v4887_v1, %v3481_v22  ;;  %v3415_v28 = vrot.slane %v3414_v31, 1  ;;  %v3418_v20 = vadd.f32 %v3417_v9, %v3326_v21  ;;  %v3846_v9 = vld [vmem:[%s4004_s22 + $0x68] sm:$0xff] }
 0x427   : > { %v3523_v29 = vadd.f32 %v4892_v63, %v3501_v46  ;;  %v3435_v5 = vmul.f32 0.125, %v3404_v10  ;;  %v3408_v23 = vadd.f32 %v3407_v30, %v3406_v25  ;;  %v3847_v10 = vld [vmem:[%s4004_s22 + $0x78] sm:$0xff] }
 0x428   : > { %v3821_v50 = vpop.eup %3820  ;;  %v3525_v49 = vadd.f32 %v4892_v63, %v3503_v12  ;;  %v3416_v51 = vadd.f32 %v3415_v28, %v3414_v31  ;;  %v3419_v52 = vrot.slane %v3418_v20, 2 }
 0x429   : > { %v3823_v33 = vpop.eup %3822  ;;  %v3539_v2 = vadd.f32 %v3840_v45, %v3523_v29  ;;  %v3480_v18 = vmul.f32 %v3821_v50, %v4948_v17  ;;  %v3451_v43 = vadd.f32 1e-05, %v3435_v5  ;;  %v3409_v14 = vrot.slane %v3408_v23, 1 }
 0x42a   : > { %v3541_v19 = vadd.f32 %v3841_v41, %v3525_v49  ;;  %v3482_v16 = vmul.f32 %v3823_v33, %v4953_v39  ;;  %v3437_v3 = vmul.f32 0.125, %v3416_v51  ;;  %v3420_v60 = vadd.f32 %v3419_v52, %v3418_v20 }
 0x42b   : > { %3555 = vst [vmem:[%s4903_s25 + $0x40] sm:$0xff] %v3539_v2  ;;  %v3502_v57 = vmul.f32 %v4887_v1, %v3480_v18  ;;  %3824 = vrsqrt.f32 %v3451_v43  ;;  %v3410_v7 = vadd.f32 %v3409_v14, %v3408_v23 }
 0x42c   : > { %3557 = vst [vmem:[%s4903_s25 + $0x50] sm:$0xff] %v3541_v19  ;;  %v3504_v15 = vmul.f32 %v4887_v1, %v3482_v16  ;;  %v3453_v17 = vadd.f32 1e-05, %v3437_v3  ;;  %v3421_v6 = vrot.slane %v3420_v60, 1 }
 0x42d   : > { %v3524_v48 = vadd.f32 %v4892_v63, %v3502_v57  ;;  %v3436_v27 = vmul.f32 0.125, %v3410_v7 }
 0x42e   : > { %v3526_v39 = vadd.f32 %v4892_v63, %v3504_v15  ;;  %3826 = vrsqrt.f32 %v3453_v17  ;;  %v3422_v37 = vadd.f32 %v3421_v6, %v3420_v60 }
 0x42f   : > { %v3540_v59 = vadd.f32 %v3842_v47, %v3524_v48  ;;  %v3452_v4 = vadd.f32 1e-05, %v3436_v27 }
 0x430   : > { %v3542_v61 = vadd.f32 %v3843_v40, %v3526_v39  ;;  %v3438_v54 = vmul.f32 0.125, %v3422_v37 }
 0x431   : > { %3556 = vst [vmem:[%s4903_s25 + $0x48] sm:$0xff] %v3540_v59  ;;  %3828 = vrsqrt.f32 %v3452_v4 }
 0x432   : > { %3558 = vst [vmem:[%s4903_s25 + $0x58] sm:$0xff] %v3542_v61  ;;  %v3454_v36 = vadd.f32 1e-05, %v3438_v54 }
 0x434   : > { %3830 = vrsqrt.f32 %v3454_v36 }
 0x438   : > { %v3825_v62 = vpop.eup %3824 }
 0x439   : > { %v3483_v8 = vmul.f32 %v3825_v62, %v4989_v53 }
 0x43b   : > { %v3827_v38 = vpop.eup %3826  ;;  %v3505_v11 = vmul.f32 %v4887_v1, %v3483_v8 }
 0x43c   : > { %v3485_v58 = vmul.f32 %v3827_v38, %v4995_v26  ;;  %v3845_v26 = vld [vmem:[%s4004_s22 + $0x70] sm:$0xff] }
 0x43d   : > { %v3527_v34 = vadd.f32 %v4892_v63, %v3505_v11 }
 0x43e   : > { %v3829_v42 = vpop.eup %3828  ;;  %v3507_v0 = vmul.f32 %v4887_v1, %v3485_v58 }
 0x43f   : > { %v3543_v55 = vadd.f32 %v3844_v32, %v3527_v34  ;;  %v3484_v21 = vmul.f32 %v3829_v42, %v5000_v13 }
 0x440   : > { %v3529_v53 = vadd.f32 %v4892_v63, %v3507_v0 }
 0x441   : > { %v3831_v35 = vpop.eup %3830  ;;  %3559 = vst [vmem:[%s4903_s25 + $0x60] sm:$0xff] %v3543_v55  ;;  %v3506_v44 = vmul.f32 %v4887_v1, %v3484_v21 }
 0x442   : > { %v3545_v24 = vadd.f32 %v3845_v26, %v3529_v53  ;;  %v3486_v25 = vmul.f32 %v3831_v35, %v5005_v56 }
 0x443   : > { %v3528_v22 = vadd.f32 %v4892_v63, %v3506_v44 }
 0x444   : > { %3561 = vst [vmem:[%s4903_s25 + $0x70] sm:$0xff] %v3545_v24  ;;  %v3508_v31 = vmul.f32 %v4887_v1, %v3486_v25 }
 0x445   : > { %v3544_v46 = vadd.f32 %v3846_v9, %v3528_v22 }
 0x446   : > { %v3530_v13 = vadd.f32 %v4892_v63, %v3508_v31 }
 0x447   : > { %3560 = vst [vmem:[%s4903_s25 + $0x68] sm:$0xff] %v3544_v46 }
 0x448   : > { %v3546_v30 = vadd.f32 %v3847_v10, %v3530_v13 }
 0x44a   : > { %3562 = vst [vmem:[%s4903_s25 + $0x78] sm:$0xff] %v3546_v30 }
 0x44b PF: > { %p18_p9 = scmp.ge.s32.totalorder %s3950_s21, 4   ;;  %s5118_s17 = smov %s3866_s18 }
 0x44c   : > { %s5119_s18 = smov %s3959_s24  ;;  %s5120_s19 = smov %s3950_s21 }
 0x44d   :  { %20 = sbr.rel (!%p18_p9) target bundleno = 2 (0x2), region = 127 }

</bundles_post_ra>
